<compile_context>
chip_gen: v7x
topology: tpu7x:2x2x1
jax: 0.10.0
libtpu: 0.0.40
codegen_flags: <defaults>
</compile_context>

<pallas_src>
import functools

import jax
import jax.numpy as jnp
from jax import lax
from jax.experimental import pallas as pl
from jax.experimental.pallas import tpu as pltpu


# ----------------------------------------------------------------------------
# Shared in-kernel helpers
# ----------------------------------------------------------------------------
def _layernorm(v, ln_ref):
    """LayerNorm over the last axis. ln_ref row 0 = gamma, row 1 = beta."""
    g = ln_ref[0, :]
    b = ln_ref[1, :]
    mu = jnp.mean(v, axis=-1, keepdims=True)
    var = jnp.mean(jnp.square(v - mu), axis=-1, keepdims=True)
    return (v - mu) * lax.rsqrt(var + 1e-12) * g + b


# ----------------------------------------------------------------------------
# Kernel 1: fully fused BERT encoder layer, grid over batch.
#   emb LN -> fused QKV -> per-head attention (static head loop) -> output
#   projection (accumulated per head) -> LN -> FFN -> LN, all in one kernel.
# ----------------------------------------------------------------------------
def encoder_kernel(nh, emb_ref, maskb_ref, ln_emb_ref, wqkv_ref, bqkv_ref,
                   wo_ref, bo_ref, ln1_ref, w1_ref, b1_ref, w2_ref, b2_ref,
                   ln2_ref, out_ref):
    _, S, H = emb_ref.shape
    hd = H // nh
    bf16 = jnp.bfloat16

    x = _layernorm(emb_ref[0], ln_emb_ref)                           # (S, H) f32
    # 1/sqrt(hd) already folded into the Q columns of wqkv / bqkv at init time.
    qkv = (jnp.dot(x.astype(bf16), wqkv_ref[...],
                   preferred_element_type=jnp.float32)
           + bqkv_ref[...])                                          # (S, 3H) f32
    qkv_b = qkv.astype(bf16)

    bias = maskb_ref[0]                                              # (1, S) additive

    # Per-head attention with the output projection accumulated head-by-head:
    # attn = sum_h softmax(q_h k_h^T + bias) v_h @ wo[h*hd:(h+1)*hd, :]
    attn = jnp.zeros((S, H), jnp.float32)
    for h in range(nh):                                              # static loop
        q = qkv_b[:, h * hd:(h + 1) * hd]
        k = qkv_b[:, H + h * hd:H + (h + 1) * hd]
        v = qkv_b[:, 2 * H + h * hd:2 * H + (h + 1) * hd]
        s = jnp.einsum('qd,kd->qk', q, k,
                       preferred_element_type=jnp.float32)           # (S, S) f32
        s = s + bias
        s = s - jnp.max(s, axis=-1, keepdims=True)
        p = jnp.exp(s)
        p = p * pl.reciprocal(jnp.sum(p, axis=-1, keepdims=True), approx=True)
        ctx_h = jnp.dot(p.astype(bf16), v,
                        preferred_element_type=jnp.float32)          # (S, hd) f32
        attn = attn + jnp.dot(ctx_h.astype(bf16),
                              wo_ref[h * hd:(h + 1) * hd, :],
                              preferred_element_type=jnp.float32)
    attn = attn + bo_ref[...]

    x = _layernorm(x + attn, ln1_ref)

    h1 = (jnp.dot(x.astype(bf16), w1_ref[...],
                  preferred_element_type=jnp.float32) + b1_ref[...])
    # TODO(synk): HF BERT default is exact erf GELU; tanh approximation kept
    # here for guaranteed Mosaic lowering (small numeric divergence).
    h1 = jax.nn.gelu(h1, approximate=True)
    ffn = (jnp.dot(h1.astype(bf16), w2_ref[...],
                   preferred_element_type=jnp.float32) + b2_ref[...])
    out_ref[0] = _layernorm(x + ffn, ln2_ref).astype(out_ref.dtype)


def bert_encoder(emb, mask_bias, enc):
    """emb: (B,S,H) f32, mask_bias: (B,1,S) f32 additive -> (B,S,H) f32."""
    B, S, H = emb.shape
    nh = enc['num_heads']

    def full(a):      # whole-array block under grid (B,)
        return pl.BlockSpec(a.shape, lambda b, _n=a.ndim: (0,) * _n)

    ws = (enc['ln_emb'], enc['wqkv'], enc['bqkv'], enc['wo'], enc['bo'],
          enc['ln1'], enc['w1'], enc['b1'], enc['w2'], enc['b2'], enc['ln2'])

    # TODO(synk): for B == 1 on v7x, grid over S-tiles (flash-style) instead of
    # batch so both TensorCores get work; with B >= 2 the batch axis suffices.
    return pl.pallas_call(
        functools.partial(encoder_kernel, nh),
        out_shape=jax.ShapeDtypeStruct((B, S, H), jnp.float32),
        grid=(B,),
        in_specs=[pl.BlockSpec((1, S, H), lambda b: (b, 0, 0)),
                  pl.BlockSpec((1, 1, S), lambda b: (b, 0, 0))]
                 + [full(a) for a in ws],
        out_specs=pl.BlockSpec((1, S, H), lambda b: (b, 0, 0)),
        compiler_params=pltpu.CompilerParams(
            dimension_semantics=("parallel",),
            vmem_limit_bytes=48 * 1024 * 1024),
    )(emb, mask_bias, *ws)


# ----------------------------------------------------------------------------
# Kernel 2: bidirectional LSTM (whole, sublane-padded batch) + fused fc head.
# PyTorch gate order i, f, g, o; b_ih + b_hh folded into one bias row.
#   * Forward direction: full recurrence; per-chunk staged input projections
#     in a small (chunk, B, 4hr) VMEM scratch; inner loop unrolled per chunk.
#   * Backward direction: only its first step (timestep S-1, zero state)
#     reaches output[:, -1, hr:], so only that single cell is evaluated.
# ----------------------------------------------------------------------------
def bilstm_head_kernel(hr, ch, xt_ref, wih_f_ref, whh_f_ref, b_f_ref,
                       wih_b_ref, b_b_ref, fcw_f_ref, fcw_b_ref, fcb_ref,
                       out_ref, xg_ref):
    S, B, H = xt_ref.shape
    bf16 = jnp.bfloat16

    def cell(g, c):
        i = jax.nn.sigmoid(g[:, 0 * hr:1 * hr])
        f = jax.nn.sigmoid(g[:, 1 * hr:2 * hr])
        gg = jnp.tanh(g[:, 2 * hr:3 * hr])
        o = jax.nn.sigmoid(g[:, 3 * hr:4 * hr])
        c_new = f * c + i * gg
        return o * jnp.tanh(c_new), c_new

    z = jnp.zeros((B, hr), jnp.float32)

    # Backward direction: single live step (timestep S-1, zero initial state).
    gb = (jnp.dot(xt_ref[S - 1].astype(bf16), wih_b_ref[...],
                  preferred_element_type=jnp.float32) + b_b_ref[...])
    hb_last, _ = cell(gb, z)

    # Forward direction: chunked staging + recurrence.
    def chunk_body(ci, carry):
        start = pl.multiple_of(ci * ch, ch)
        xc = xt_ref[pl.ds(start, ch)].reshape(ch * B, H).astype(bf16)
        xg_ref[...] = (jnp.dot(xc, wih_f_ref[...],
                               preferred_element_type=jnp.float32)
                       + b_f_ref[...]).reshape(ch, B, 4 * hr)

        def step(j, c2):
            hf, cf = c2
            g = xg_ref[j] + jnp.dot(hf.astype(bf16), whh_f_ref[...],
                                    preferred_element_type=jnp.float32)
            return cell(g, cf)

        return lax.fori_loop(0, ch, step, carry, unroll=True)

    hf, _ = lax.fori_loop(0, S // ch, chunk_body, (z, z))

    # Fused classification head: logits = [hf, hb_last] @ fc_w + fc_b
    out_ref[...] = (jnp.dot(hf.astype(bf16), fcw_f_ref[...],
                            preferred_element_type=jnp.float32)
                    + jnp.dot(hb_last.astype(bf16), fcw_b_ref[...],
                              preferred_element_type=jnp.float32)
                    + fcb_ref[...]).astype(out_ref.dtype)


def bilstm_classifier(x, lstm, fc_w, fc_b):
    B, S, H = x.shape
    hr = lstm['hidden']
    C = fc_w.shape[1]

    # Pad the batch to a full 8-row sublane tile (filling sublanes is ~free
    # and the padded rows are independent / sliced away).
    B_pad = max(8, ((B + 7) // 8) * 8)
    xt = jnp.swapaxes(x, 0, 1)                                   # (S, B, H) glue
    if B_pad != B:
        xt = jnp.pad(xt, ((0, 0), (0, B_pad - B), (0, 0)))

    ch = min(S, 8)                                               # staging chunk
    assert S % ch == 0, "sequence length must be a multiple of the chunk size"

    fcw_f, fcw_b = fc_w[:hr], fc_w[hr:]
    out = pl.pallas_call(
        functools.partial(bilstm_head_kernel, hr, ch),
        out_shape=jax.ShapeDtypeStruct((B_pad, C), jnp.float32),
        scratch_shapes=[pltpu.VMEM((ch, B_pad, 4 * hr), jnp.float32)],
        compiler_params=pltpu.CompilerParams(
            vmem_limit_bytes=48 * 1024 * 1024),
    )(xt, lstm['wih_f'], lstm['whh_f'], lstm['b_f'],
      lstm['wih_b'], lstm['b_b'], fcw_f, fcw_b, fc_b)
    return out[:B]


# ----------------------------------------------------------------------------
# Parameter construction (deterministic, synthetic 1-layer BERT-style encoder)
# ----------------------------------------------------------------------------
def init_params(key, vocab, S, H, NH, I, rnn_hidden, num_classes):
    ks = jax.random.split(key, 20)
    bf16 = jnp.bfloat16
    hd = H // NH
    scale = 1.0 / (hd ** 0.5)

    def norm(k, shape, scale_=0.02, dtype=jnp.float32):
        return (scale_ * jax.random.normal(k, shape)).astype(dtype)

    def ln_pair():      # row 0 = gamma, row 1 = beta
        return jnp.stack([jnp.ones((H,)), jnp.zeros((H,))]).astype(jnp.float32)

    # Attention scale folded into the Q columns of wqkv / bqkv (exact: scaling
    # W_q and b_q by 1/sqrt(hd) equals scaling q). Reference uses the same
    # folded weights, so semantics are unchanged.
    wqkv = 0.02 * jax.random.normal(ks[2], (H, 3 * H))
    wqkv = wqkv.at[:, :H].multiply(scale)
    bqkv = 0.02 * jax.random.normal(ks[3], (1, 3 * H))
    bqkv = bqkv.at[:, :H].multiply(scale)

    params = {
        'word_emb': norm(ks[0], (vocab, H)),
        'pos_emb': norm(ks[1], (S, H)),
        'encoder': {
            'num_heads': NH,
            'ln_emb': ln_pair(),
            # Weights stored pre-transposed [in, out] and in bf16 (MXU operands).
            'wqkv': wqkv.astype(bf16),
            'bqkv': bqkv.astype(jnp.float32),
            'wo': norm(ks[4], (H, H), dtype=bf16),
            'bo': norm(ks[5], (1, H)),
            'ln1': ln_pair(),
            'w1': norm(ks[6], (H, I), dtype=bf16),
            'b1': norm(ks[7], (1, I)),
            'w2': norm(ks[8], (I, H), dtype=bf16),
            'b2': norm(ks[9], (1, H)),
            'ln2': ln_pair(),
        },
    }
    if rnn_hidden:
        params['lstm'] = {
            'hidden': rnn_hidden,
            'wih_f': norm(ks[10], (H, 4 * rnn_hidden), 0.1, bf16),
            'whh_f': norm(ks[11], (rnn_hidden, 4 * rnn_hidden), 0.1, bf16),
            'b_f': norm(ks[12], (1, 4 * rnn_hidden), 0.05),      # b_ih + b_hh folded
            'wih_b': norm(ks[13], (H, 4 * rnn_hidden), 0.1, bf16),
            'whh_b': norm(ks[14], (rnn_hidden, 4 * rnn_hidden), 0.1, bf16),
            'b_b': norm(ks[15], (1, 4 * rnn_hidden), 0.05),
        }
        params['fc_w'] = norm(ks[16], (2 * rnn_hidden, num_classes), 0.1, bf16)
    else:
        params['fc_w'] = norm(ks[16], (H, num_classes), 0.1, bf16)
    params['fc_b'] = norm(ks[17], (1, num_classes), 0.02)
    return params


# ----------------------------------------------------------------------------
# Full forward (mirrors BertForClassification.forward)
# ----------------------------------------------------------------------------
def bert_for_classification(params, input_ids, attention_mask, rnn_hidden_size):
    # Embedding lookup is glue (gather); kernels do the heavy compute.
    emb = params['word_emb'][input_ids] + params['pos_emb'][None, :, :]   # (B,S,H)
    # Additive attention-mask bias precomputed once (HF-style -10000 mask).
    mask_bias = (1.0 - attention_mask.astype(jnp.float32))[:, None, :] * (-10000.0)

    last_hidden_state = bert_encoder(emb, mask_bias, params['encoder'])   # (B,S,H)

    if rnn_hidden_size:
        # BiLSTM + output[:, -1, :] pooling + fc head fused into one kernel.
        return bilstm_classifier(last_hidden_state, params['lstm'],
                                 params['fc_w'], params['fc_b'])
    # No-RNN branch: tiny (B,H)x(H,C) matmul — left to XLA (kernel overhead
    # would dominate the microseconds of work).
    pooled = last_hidden_state[:, 0, :]
    return jnp.dot(pooled, params['fc_w'].astype(jnp.float32)) + params['fc_b'][0]


# ----------------------------------------------------------------------------
# Pure-JAX reference (same bf16 weights, f32 math) for correctness check
# ----------------------------------------------------------------------------
def reference_forward(params, input_ids, attention_mask, rnn_hidden_size):
    f32 = lambda a: a.astype(jnp.float32)
    enc = params['encoder']
    nh = enc['num_heads']
    emb = params['word_emb'][input_ids] + params['pos_emb'][None, :, :]
    B, S, H = emb.shape
    hd = H // nh

    def ln(v, p):
        mu = jnp.mean(v, -1, keepdims=True)
        var = jnp.mean(jnp.square(v - mu), -1, keepdims=True)
        return (v - mu) * lax.rsqrt(var + 1e-12) * p[0] + p[1]

    x = ln(emb, enc['ln_emb'])
    qkv = x @ f32(enc['wqkv']) + enc['bqkv'][0]

    def split(t):
        return t.reshape(B, S, nh, hd).transpose(0, 2, 1, 3)

    q, k, v = split(qkv[..., :H]), split(qkv[..., H:2 * H]), split(qkv[..., 2 * H:])
    bias = (1.0 - attention_mask.astype(jnp.float32))[:, None, None, :] * (-10000.0)
    # NOTE: 1/sqrt(hd) is already folded into the Q columns of wqkv/bqkv.
    s = jnp.einsum('bnqd,bnkd->bnqk', q, k) + bias
    p = jax.nn.softmax(s, axis=-1)
    ctx = jnp.einsum('bnqk,bnkd->bnqd', p, v).transpose(0, 2, 1, 3).reshape(B, S, H)
    x = ln(x + ctx @ f32(enc['wo']) + enc['bo'][0], enc['ln1'])
    h = jax.nn.gelu(x @ f32(enc['w1']) + enc['b1'][0], approximate=True)
    x = ln(x + h @ f32(enc['w2']) + enc['b2'][0], enc['ln2'])

    if not rnn_hidden_size:
        return x[:, 0, :] @ f32(params['fc_w']) + params['fc_b'][0]

    lstm = params['lstm']
    hr = lstm['hidden']

    def run_dir(seq, wih, whh, b):
        xg = jnp.einsum('bsh,hg->sbg', seq, f32(wih)) + b[0]

        def step(carry, g_in):
            h, c = carry
            g = g_in + h @ f32(whh)
            i = jax.nn.sigmoid(g[:, :hr])
            fg = jax.nn.sigmoid(g[:, hr:2 * hr])
            gg = jnp.tanh(g[:, 2 * hr:3 * hr])
            o = jax.nn.sigmoid(g[:, 3 * hr:])
            c = fg * c + i * gg
            h = o * jnp.tanh(c)
            return (h, c), h

        init = (jnp.zeros((B, hr)), jnp.zeros((B, hr)))
        (h_T, _), ys = lax.scan(step, init, xg)
        return h_T, ys

    h_fwd, _ = run_dir(x, lstm['wih_f'], lstm['whh_f'], lstm['b_f'])
    _, ys_b = run_dir(x[:, ::-1, :], lstm['wih_b'], lstm['whh_b'], lstm['b_b'])
    pooled = jnp.concatenate([h_fwd, ys_b[0]], axis=-1)   # output[:, -1, :]
    return pooled @ f32(params['fc_w']) + params['fc_b'][0]


if __name__ == "__main__":
    B, S, H, NH, I, V = 2, 8, 32, 4, 64, 64
    RNN_HIDDEN, NUM_CLASSES = 16, 4

    key = jax.random.PRNGKey(0)
    k_params, k_ids = jax.random.split(key)

    params = init_params(k_params, V, S, H, NH, I, RNN_HIDDEN, NUM_CLASSES)
    input_ids = jax.random.randint(k_ids, (B, S), 0, V, dtype=jnp.int32)
    attention_mask = jnp.array([[1] * S, [1] * 6 + [0] * 2], dtype=jnp.int32)

    logits = bert_for_classification(params, input_ids, attention_mask, RNN_HIDDEN)
    jax.block_until_ready(logits)

    assert logits.shape == (B, NUM_CLASSES)
    assert bool(jnp.all(jnp.isfinite(logits)))

    ref = reference_forward(params, input_ids, attention_mask, RNN_HIDDEN)
    max_err = float(jnp.max(jnp.abs(logits - ref)))
    assert max_err < 3e-2, f"kernel vs pure-JAX reference mismatch: {max_err}"

    print("KERNEL_OK")
</pallas_src>

<mosaic_0001>
module attributes {stable_mosaic.version = 11 : i64} {
  func.func @encoder_kernel(%arg0: i32, %arg1: memref<1x8x32xf32, #tpu.memory_space<vmem>>, %arg2: memref<1x1x8xf32, #tpu.memory_space<vmem>>, %arg3: memref<2x32xf32, #tpu.memory_space<vmem>>, %arg4: memref<32x96xbf16, #tpu.memory_space<vmem>>, %arg5: memref<1x96xf32, #tpu.memory_space<vmem>>, %arg6: memref<32x32xbf16, #tpu.memory_space<vmem>>, %arg7: memref<1x32xf32, #tpu.memory_space<vmem>>, %arg8: memref<2x32xf32, #tpu.memory_space<vmem>>, %arg9: memref<32x64xbf16, #tpu.memory_space<vmem>>, %arg10: memref<1x64xf32, #tpu.memory_space<vmem>>, %arg11: memref<64x32xbf16, #tpu.memory_space<vmem>>, %arg12: memref<1x32xf32, #tpu.memory_space<vmem>>, %arg13: memref<2x32xf32, #tpu.memory_space<vmem>>, %arg14: memref<1x8x32xf32, #tpu.memory_space<vmem>>) attributes {dimension_semantics = [#tpu.dimension_semantics<parallel>], iteration_bounds = array<i64: 2>, scalar_prefetch = 0 : i64, scratch_operands = 0 : i64, tpu.core_type = #tpu.core_type<tc>, window_params = [{transform_indices = @transform_0, window_bounds = array<i64: 1, 8, 32>}, {transform_indices = @transform_1, window_bounds = array<i64: 1, 1, 8>}, {pipeline_mode = #tpu.pipeline_mode<synchronous>, transform_indices = @transform_2, window_bounds = array<i64: 2, 32>}, {pipeline_mode = #tpu.pipeline_mode<synchronous>, transform_indices = @transform_3, window_bounds = array<i64: 32, 96>}, {pipeline_mode = #tpu.pipeline_mode<synchronous>, transform_indices = @transform_4, window_bounds = array<i64: 1, 96>}, {pipeline_mode = #tpu.pipeline_mode<synchronous>, transform_indices = @transform_5, window_bounds = array<i64: 32, 32>}, {pipeline_mode = #tpu.pipeline_mode<synchronous>, transform_indices = @transform_6, window_bounds = array<i64: 1, 32>}, {pipeline_mode = #tpu.pipeline_mode<synchronous>, transform_indices = @transform_7, window_bounds = array<i64: 2, 32>}, {pipeline_mode = #tpu.pipeline_mode<synchronous>, transform_indices = @transform_8, window_bounds = array<i64: 32, 64>}, {pipeline_mode = #tpu.pipeline_mode<synchronous>, transform_indices = @transform_9, window_bounds = array<i64: 1, 64>}, {pipeline_mode = #tpu.pipeline_mode<synchronous>, transform_indices = @transform_10, window_bounds = array<i64: 64, 32>}, {pipeline_mode = #tpu.pipeline_mode<synchronous>, transform_indices = @transform_11, window_bounds = array<i64: 1, 32>}, {pipeline_mode = #tpu.pipeline_mode<synchronous>, transform_indices = @transform_12, window_bounds = array<i64: 2, 32>}, {transform_indices = @transform_13, window_bounds = array<i64: 1, 8, 32>}]} {
    %c0 = arith.constant 0 : index
    %c0_0 = arith.constant 0 : index
    %c0_1 = arith.constant 0 : index
    %0 = vector.load %arg1[%c0, %c0_0, %c0_1] : memref<1x8x32xf32, #tpu.memory_space<vmem>>, vector<1x8x32xf32>
    %1 = vector.shape_cast %0 : vector<1x8x32xf32> to vector<8x32xf32>
    %c0_2 = arith.constant 0 : index
    %c0_3 = arith.constant 0 : index
    %2 = vector.load %arg3[%c0_2, %c0_3] : memref<2x32xf32, #tpu.memory_space<vmem>>, vector<1x32xf32>
    %3 = vector.shape_cast %2 : vector<1x32xf32> to vector<32xf32>
    %c1 = arith.constant 1 : index
    %c0_4 = arith.constant 0 : index
    %4 = vector.load %arg3[%c1, %c0_4] : memref<2x32xf32, #tpu.memory_space<vmem>>, vector<1x32xf32>
    %5 = vector.shape_cast %4 : vector<1x32xf32> to vector<32xf32>
    %cst = arith.constant dense<0.000000e+00> : vector<8xf32>
    %6 = vector.multi_reduction <add>, %1, %cst [1] : vector<8x32xf32> to vector<8xf32>
    %7 = vector.shape_cast %6 : vector<8xf32> to vector<8x1xf32>
    %cst_5 = arith.constant 3.200000e+01 : f32
    %8 = vector.broadcast %cst_5 : f32 to vector<8x1xf32>
    %9 = arith.divf %7, %8 : vector<8x1xf32>
    %10 = vector.broadcast %9 : vector<8x1xf32> to vector<8x32xf32>
    %11 = arith.subf %1, %10 : vector<8x32xf32>
    %12 = arith.mulf %11, %11 : vector<8x32xf32>
    %cst_6 = arith.constant dense<0.000000e+00> : vector<8xf32>
    %13 = vector.multi_reduction <add>, %12, %cst_6 [1] : vector<8x32xf32> to vector<8xf32>
    %14 = vector.shape_cast %13 : vector<8xf32> to vector<8x1xf32>
    %cst_7 = arith.constant 3.200000e+01 : f32
    %15 = vector.broadcast %cst_7 : f32 to vector<8x1xf32>
    %16 = arith.divf %14, %15 : vector<8x1xf32>
    %17 = vector.broadcast %9 : vector<8x1xf32> to vector<8x32xf32>
    %18 = arith.subf %1, %17 : vector<8x32xf32>
    %cst_8 = arith.constant 9.99999996E-13 : f32
    %19 = vector.broadcast %cst_8 : f32 to vector<8x1xf32>
    %20 = arith.addf %16, %19 : vector<8x1xf32>
    %21 = math.rsqrt %20 : vector<8x1xf32>
    %22 = vector.broadcast %21 : vector<8x1xf32> to vector<8x32xf32>
    %23 = arith.mulf %18, %22 : vector<8x32xf32>
    %24 = vector.shape_cast %3 : vector<32xf32> to vector<1x32xf32>
    %25 = vector.broadcast %24 : vector<1x32xf32> to vector<8x32xf32>
    %26 = arith.mulf %23, %25 : vector<8x32xf32>
    %27 = vector.shape_cast %5 : vector<32xf32> to vector<1x32xf32>
    %28 = vector.broadcast %27 : vector<1x32xf32> to vector<8x32xf32>
    %29 = arith.addf %26, %28 : vector<8x32xf32>
    %30 = arith.truncf %29 : vector<8x32xf32> to vector<8x32xbf16>
    %c0_9 = arith.constant 0 : index
    %c0_10 = arith.constant 0 : index
    %31 = vector.load %arg4[%c0_9, %c0_10] : memref<32x96xbf16, #tpu.memory_space<vmem>>, vector<32x96xbf16>
    %cst_11 = arith.constant dense<0.000000e+00> : vector<8x96xf32>
    %32 = tpu.matmul %30, %31, %cst_11 {dimension_numbers = #tpu.dot_dimension_numbers<[1], [0], [0], [1], [0, 0, 1, 1], [], []>} : vector<8x32xbf16>, vector<32x96xbf16>, vector<8x96xf32> -> vector<8x96xf32>
    %c0_12 = arith.constant 0 : index
    %c0_13 = arith.constant 0 : index
    %33 = vector.load %arg5[%c0_12, %c0_13] : memref<1x96xf32, #tpu.memory_space<vmem>>, vector<1x96xf32>
    %34 = vector.broadcast %33 : vector<1x96xf32> to vector<8x96xf32>
    %35 = arith.addf %32, %34 : vector<8x96xf32>
    %36 = arith.truncf %35 : vector<8x96xf32> to vector<8x96xbf16>
    %c0_14 = arith.constant 0 : index
    %c0_15 = arith.constant 0 : index
    %c0_16 = arith.constant 0 : index
    %37 = vector.load %arg2[%c0_14, %c0_15, %c0_16] : memref<1x1x8xf32, #tpu.memory_space<vmem>>, vector<1x1x8xf32>
    %38 = vector.shape_cast %37 : vector<1x1x8xf32> to vector<1x8xf32>
    %cst_17 = arith.constant 0.000000e+00 : f32
    %39 = vector.broadcast %cst_17 : f32 to vector<8x32xf32>
    %40 = vector.extract_strided_slice %36 {offsets = [0, 0], sizes = [8, 8], strides = [1, 1]} : vector<8x96xbf16> to vector<8x8xbf16>
    %41 = vector.extract_strided_slice %36 {offsets = [0, 32], sizes = [8, 8], strides = [1, 1]} : vector<8x96xbf16> to vector<8x8xbf16>
    %42 = vector.extract_strided_slice %36 {offsets = [0, 64], sizes = [8, 8], strides = [1, 1]} : vector<8x96xbf16> to vector<8x8xbf16>
    "tpu.trace_start"() <{level = 10 : i32, message = "qd,kd->qk"}> : () -> ()
    %cst_18 = arith.constant dense<0.000000e+00> : vector<8x8xf32>
    %43 = tpu.matmul %40, %41, %cst_18 {dimension_numbers = #tpu.dot_dimension_numbers<[1], [1], [0], [0], [0, 0, 1, 0], [], []>} : vector<8x8xbf16>, vector<8x8xbf16>, vector<8x8xf32> -> vector<8x8xf32>
    "tpu.trace_stop"() : () -> ()
    %44 = vector.broadcast %38 : vector<1x8xf32> to vector<8x8xf32>
    %45 = arith.addf %43, %44 : vector<8x8xf32>
    %cst_19 = arith.constant dense<0xFF800000> : vector<8xf32>
    %46 = vector.multi_reduction <maximumf>, %45, %cst_19 [1] : vector<8x8xf32> to vector<8xf32>
    %47 = vector.shape_cast %46 : vector<8xf32> to vector<8x1xf32>
    %48 = vector.broadcast %47 : vector<8x1xf32> to vector<8x8xf32>
    %49 = arith.subf %45, %48 : vector<8x8xf32>
    %50 = math.exp %49 : vector<8x8xf32>
    %cst_20 = arith.constant dense<0.000000e+00> : vector<8xf32>
    %51 = vector.multi_reduction <add>, %50, %cst_20 [1] : vector<8x8xf32> to vector<8xf32>
    %52 = vector.shape_cast %51 : vector<8xf32> to vector<8x1xf32>
    %53 = tpu.reciprocal %52 {approx = true} : vector<8x1xf32> -> vector<8x1xf32>
    %54 = vector.broadcast %53 : vector<8x1xf32> to vector<8x8xf32>
    %55 = arith.mulf %50, %54 : vector<8x8xf32>
    %56 = arith.truncf %55 : vector<8x8xf32> to vector<8x8xbf16>
    %cst_21 = arith.constant dense<0.000000e+00> : vector<8x8xf32>
    %57 = tpu.matmul %56, %42, %cst_21 {dimension_numbers = #tpu.dot_dimension_numbers<[1], [0], [0], [1], [0, 0, 1, 1], [], []>} : vector<8x8xbf16>, vector<8x8xbf16>, vector<8x8xf32> -> vector<8x8xf32>
    %58 = arith.truncf %57 : vector<8x8xf32> to vector<8x8xbf16>
    %c0_22 = arith.constant 0 : index
    %c0_23 = arith.constant 0 : index
    %59 = vector.load %arg6[%c0_22, %c0_23] : memref<32x32xbf16, #tpu.memory_space<vmem>>, vector<8x32xbf16>
    %cst_24 = arith.constant dense<0.000000e+00> : vector<8x32xf32>
    %60 = tpu.matmul %58, %59, %cst_24 {dimension_numbers = #tpu.dot_dimension_numbers<[1], [0], [0], [1], [0, 0, 1, 1], [], []>} : vector<8x8xbf16>, vector<8x32xbf16>, vector<8x32xf32> -> vector<8x32xf32>
    %61 = arith.addf %39, %60 : vector<8x32xf32>
    %62 = vector.extract_strided_slice %36 {offsets = [0, 8], sizes = [8, 8], strides = [1, 1]} : vector<8x96xbf16> to vector<8x8xbf16>
    %63 = vector.extract_strided_slice %36 {offsets = [0, 40], sizes = [8, 8], strides = [1, 1]} : vector<8x96xbf16> to vector<8x8xbf16>
    %64 = vector.extract_strided_slice %36 {offsets = [0, 72], sizes = [8, 8], strides = [1, 1]} : vector<8x96xbf16> to vector<8x8xbf16>
    "tpu.trace_start"() <{level = 10 : i32, message = "qd,kd->qk"}> : () -> ()
    %cst_25 = arith.constant dense<0.000000e+00> : vector<8x8xf32>
    %65 = tpu.matmul %62, %63, %cst_25 {dimension_numbers = #tpu.dot_dimension_numbers<[1], [1], [0], [0], [0, 0, 1, 0], [], []>} : vector<8x8xbf16>, vector<8x8xbf16>, vector<8x8xf32> -> vector<8x8xf32>
    "tpu.trace_stop"() : () -> ()
    %66 = vector.broadcast %38 : vector<1x8xf32> to vector<8x8xf32>
    %67 = arith.addf %65, %66 : vector<8x8xf32>
    %cst_26 = arith.constant dense<0xFF800000> : vector<8xf32>
    %68 = vector.multi_reduction <maximumf>, %67, %cst_26 [1] : vector<8x8xf32> to vector<8xf32>
    %69 = vector.shape_cast %68 : vector<8xf32> to vector<8x1xf32>
    %70 = vector.broadcast %69 : vector<8x1xf32> to vector<8x8xf32>
    %71 = arith.subf %67, %70 : vector<8x8xf32>
    %72 = math.exp %71 : vector<8x8xf32>
    %cst_27 = arith.constant dense<0.000000e+00> : vector<8xf32>
    %73 = vector.multi_reduction <add>, %72, %cst_27 [1] : vector<8x8xf32> to vector<8xf32>
    %74 = vector.shape_cast %73 : vector<8xf32> to vector<8x1xf32>
    %75 = tpu.reciprocal %74 {approx = true} : vector<8x1xf32> -> vector<8x1xf32>
    %76 = vector.broadcast %75 : vector<8x1xf32> to vector<8x8xf32>
    %77 = arith.mulf %72, %76 : vector<8x8xf32>
    %78 = arith.truncf %77 : vector<8x8xf32> to vector<8x8xbf16>
    %cst_28 = arith.constant dense<0.000000e+00> : vector<8x8xf32>
    %79 = tpu.matmul %78, %64, %cst_28 {dimension_numbers = #tpu.dot_dimension_numbers<[1], [0], [0], [1], [0, 0, 1, 1], [], []>} : vector<8x8xbf16>, vector<8x8xbf16>, vector<8x8xf32> -> vector<8x8xf32>
    %80 = arith.truncf %79 : vector<8x8xf32> to vector<8x8xbf16>
    %c8 = arith.constant 8 : index
    %c0_29 = arith.constant 0 : index
    %81 = vector.load %arg6[%c8, %c0_29] : memref<32x32xbf16, #tpu.memory_space<vmem>>, vector<8x32xbf16>
    %cst_30 = arith.constant dense<0.000000e+00> : vector<8x32xf32>
    %82 = tpu.matmul %80, %81, %cst_30 {dimension_numbers = #tpu.dot_dimension_numbers<[1], [0], [0], [1], [0, 0, 1, 1], [], []>} : vector<8x8xbf16>, vector<8x32xbf16>, vector<8x32xf32> -> vector<8x32xf32>
    %83 = arith.addf %61, %82 : vector<8x32xf32>
    %84 = vector.extract_strided_slice %36 {offsets = [0, 16], sizes = [8, 8], strides = [1, 1]} : vector<8x96xbf16> to vector<8x8xbf16>
    %85 = vector.extract_strided_slice %36 {offsets = [0, 48], sizes = [8, 8], strides = [1, 1]} : vector<8x96xbf16> to vector<8x8xbf16>
    %86 = vector.extract_strided_slice %36 {offsets = [0, 80], sizes = [8, 8], strides = [1, 1]} : vector<8x96xbf16> to vector<8x8xbf16>
    "tpu.trace_start"() <{level = 10 : i32, message = "qd,kd->qk"}> : () -> ()
    %cst_31 = arith.constant dense<0.000000e+00> : vector<8x8xf32>
    %87 = tpu.matmul %84, %85, %cst_31 {dimension_numbers = #tpu.dot_dimension_numbers<[1], [1], [0], [0], [0, 0, 1, 0], [], []>} : vector<8x8xbf16>, vector<8x8xbf16>, vector<8x8xf32> -> vector<8x8xf32>
    "tpu.trace_stop"() : () -> ()
    %88 = vector.broadcast %38 : vector<1x8xf32> to vector<8x8xf32>
    %89 = arith.addf %87, %88 : vector<8x8xf32>
    %cst_32 = arith.constant dense<0xFF800000> : vector<8xf32>
    %90 = vector.multi_reduction <maximumf>, %89, %cst_32 [1] : vector<8x8xf32> to vector<8xf32>
    %91 = vector.shape_cast %90 : vector<8xf32> to vector<8x1xf32>
    %92 = vector.broadcast %91 : vector<8x1xf32> to vector<8x8xf32>
    %93 = arith.subf %89, %92 : vector<8x8xf32>
    %94 = math.exp %93 : vector<8x8xf32>
    %cst_33 = arith.constant dense<0.000000e+00> : vector<8xf32>
    %95 = vector.multi_reduction <add>, %94, %cst_33 [1] : vector<8x8xf32> to vector<8xf32>
    %96 = vector.shape_cast %95 : vector<8xf32> to vector<8x1xf32>
    %97 = tpu.reciprocal %96 {approx = true} : vector<8x1xf32> -> vector<8x1xf32>
    %98 = vector.broadcast %97 : vector<8x1xf32> to vector<8x8xf32>
    %99 = arith.mulf %94, %98 : vector<8x8xf32>
    %100 = arith.truncf %99 : vector<8x8xf32> to vector<8x8xbf16>
    %cst_34 = arith.constant dense<0.000000e+00> : vector<8x8xf32>
    %101 = tpu.matmul %100, %86, %cst_34 {dimension_numbers = #tpu.dot_dimension_numbers<[1], [0], [0], [1], [0, 0, 1, 1], [], []>} : vector<8x8xbf16>, vector<8x8xbf16>, vector<8x8xf32> -> vector<8x8xf32>
    %102 = arith.truncf %101 : vector<8x8xf32> to vector<8x8xbf16>
    %c16 = arith.constant 16 : index
    %c0_35 = arith.constant 0 : index
    %103 = vector.load %arg6[%c16, %c0_35] : memref<32x32xbf16, #tpu.memory_space<vmem>>, vector<8x32xbf16>
    %cst_36 = arith.constant dense<0.000000e+00> : vector<8x32xf32>
    %104 = tpu.matmul %102, %103, %cst_36 {dimension_numbers = #tpu.dot_dimension_numbers<[1], [0], [0], [1], [0, 0, 1, 1], [], []>} : vector<8x8xbf16>, vector<8x32xbf16>, vector<8x32xf32> -> vector<8x32xf32>
    %105 = arith.addf %83, %104 : vector<8x32xf32>
    %106 = vector.extract_strided_slice %36 {offsets = [0, 24], sizes = [8, 8], strides = [1, 1]} : vector<8x96xbf16> to vector<8x8xbf16>
    %107 = vector.extract_strided_slice %36 {offsets = [0, 56], sizes = [8, 8], strides = [1, 1]} : vector<8x96xbf16> to vector<8x8xbf16>
    %108 = vector.extract_strided_slice %36 {offsets = [0, 88], sizes = [8, 8], strides = [1, 1]} : vector<8x96xbf16> to vector<8x8xbf16>
    "tpu.trace_start"() <{level = 10 : i32, message = "qd,kd->qk"}> : () -> ()
    %cst_37 = arith.constant dense<0.000000e+00> : vector<8x8xf32>
    %109 = tpu.matmul %106, %107, %cst_37 {dimension_numbers = #tpu.dot_dimension_numbers<[1], [1], [0], [0], [0, 0, 1, 0], [], []>} : vector<8x8xbf16>, vector<8x8xbf16>, vector<8x8xf32> -> vector<8x8xf32>
    "tpu.trace_stop"() : () -> ()
    %110 = vector.broadcast %38 : vector<1x8xf32> to vector<8x8xf32>
    %111 = arith.addf %109, %110 : vector<8x8xf32>
    %cst_38 = arith.constant dense<0xFF800000> : vector<8xf32>
    %112 = vector.multi_reduction <maximumf>, %111, %cst_38 [1] : vector<8x8xf32> to vector<8xf32>
    %113 = vector.shape_cast %112 : vector<8xf32> to vector<8x1xf32>
    %114 = vector.broadcast %113 : vector<8x1xf32> to vector<8x8xf32>
    %115 = arith.subf %111, %114 : vector<8x8xf32>
    %116 = math.exp %115 : vector<8x8xf32>
    %cst_39 = arith.constant dense<0.000000e+00> : vector<8xf32>
    %117 = vector.multi_reduction <add>, %116, %cst_39 [1] : vector<8x8xf32> to vector<8xf32>
    %118 = vector.shape_cast %117 : vector<8xf32> to vector<8x1xf32>
    %119 = tpu.reciprocal %118 {approx = true} : vector<8x1xf32> -> vector<8x1xf32>
    %120 = vector.broadcast %119 : vector<8x1xf32> to vector<8x8xf32>
    %121 = arith.mulf %116, %120 : vector<8x8xf32>
    %122 = arith.truncf %121 : vector<8x8xf32> to vector<8x8xbf16>
    %cst_40 = arith.constant dense<0.000000e+00> : vector<8x8xf32>
    %123 = tpu.matmul %122, %108, %cst_40 {dimension_numbers = #tpu.dot_dimension_numbers<[1], [0], [0], [1], [0, 0, 1, 1], [], []>} : vector<8x8xbf16>, vector<8x8xbf16>, vector<8x8xf32> -> vector<8x8xf32>
    %124 = arith.truncf %123 : vector<8x8xf32> to vector<8x8xbf16>
    %c24 = arith.constant 24 : index
    %c0_41 = arith.constant 0 : index
    %125 = vector.load %arg6[%c24, %c0_41] : memref<32x32xbf16, #tpu.memory_space<vmem>>, vector<8x32xbf16>
    %cst_42 = arith.constant dense<0.000000e+00> : vector<8x32xf32>
    %126 = tpu.matmul %124, %125, %cst_42 {dimension_numbers = #tpu.dot_dimension_numbers<[1], [0], [0], [1], [0, 0, 1, 1], [], []>} : vector<8x8xbf16>, vector<8x32xbf16>, vector<8x32xf32> -> vector<8x32xf32>
    %127 = arith.addf %105, %126 : vector<8x32xf32>
    %c0_43 = arith.constant 0 : index
    %c0_44 = arith.constant 0 : index
    %128 = vector.load %arg7[%c0_43, %c0_44] : memref<1x32xf32, #tpu.memory_space<vmem>>, vector<1x32xf32>
    %129 = vector.broadcast %128 : vector<1x32xf32> to vector<8x32xf32>
    %130 = arith.addf %127, %129 : vector<8x32xf32>
    %131 = arith.addf %29, %130 : vector<8x32xf32>
    %c0_45 = arith.constant 0 : index
    %c0_46 = arith.constant 0 : index
    %132 = vector.load %arg8[%c0_45, %c0_46] : memref<2x32xf32, #tpu.memory_space<vmem>>, vector<1x32xf32>
    %133 = vector.shape_cast %132 : vector<1x32xf32> to vector<32xf32>
    %c1_47 = arith.constant 1 : index
    %c0_48 = arith.constant 0 : index
    %134 = vector.load %arg8[%c1_47, %c0_48] : memref<2x32xf32, #tpu.memory_space<vmem>>, vector<1x32xf32>
    %135 = vector.shape_cast %134 : vector<1x32xf32> to vector<32xf32>
    %cst_49 = arith.constant dense<0.000000e+00> : vector<8xf32>
    %136 = vector.multi_reduction <add>, %131, %cst_49 [1] : vector<8x32xf32> to vector<8xf32>
    %137 = vector.shape_cast %136 : vector<8xf32> to vector<8x1xf32>
    %cst_50 = arith.constant 3.200000e+01 : f32
    %138 = vector.broadcast %cst_50 : f32 to vector<8x1xf32>
    %139 = arith.divf %137, %138 : vector<8x1xf32>
    %140 = vector.broadcast %139 : vector<8x1xf32> to vector<8x32xf32>
    %141 = arith.subf %131, %140 : vector<8x32xf32>
    %142 = arith.mulf %141, %141 : vector<8x32xf32>
    %cst_51 = arith.constant dense<0.000000e+00> : vector<8xf32>
    %143 = vector.multi_reduction <add>, %142, %cst_51 [1] : vector<8x32xf32> to vector<8xf32>
    %144 = vector.shape_cast %143 : vector<8xf32> to vector<8x1xf32>
    %cst_52 = arith.constant 3.200000e+01 : f32
    %145 = vector.broadcast %cst_52 : f32 to vector<8x1xf32>
    %146 = arith.divf %144, %145 : vector<8x1xf32>
    %147 = vector.broadcast %139 : vector<8x1xf32> to vector<8x32xf32>
    %148 = arith.subf %131, %147 : vector<8x32xf32>
    %cst_53 = arith.constant 9.99999996E-13 : f32
    %149 = vector.broadcast %cst_53 : f32 to vector<8x1xf32>
    %150 = arith.addf %146, %149 : vector<8x1xf32>
    %151 = math.rsqrt %150 : vector<8x1xf32>
    %152 = vector.broadcast %151 : vector<8x1xf32> to vector<8x32xf32>
    %153 = arith.mulf %148, %152 : vector<8x32xf32>
    %154 = vector.shape_cast %133 : vector<32xf32> to vector<1x32xf32>
    %155 = vector.broadcast %154 : vector<1x32xf32> to vector<8x32xf32>
    %156 = arith.mulf %153, %155 : vector<8x32xf32>
    %157 = vector.shape_cast %135 : vector<32xf32> to vector<1x32xf32>
    %158 = vector.broadcast %157 : vector<1x32xf32> to vector<8x32xf32>
    %159 = arith.addf %156, %158 : vector<8x32xf32>
    %160 = arith.truncf %159 : vector<8x32xf32> to vector<8x32xbf16>
    %c0_54 = arith.constant 0 : index
    %c0_55 = arith.constant 0 : index
    %161 = vector.load %arg9[%c0_54, %c0_55] : memref<32x64xbf16, #tpu.memory_space<vmem>>, vector<32x64xbf16>
    %cst_56 = arith.constant dense<0.000000e+00> : vector<8x64xf32>
    %162 = tpu.matmul %160, %161, %cst_56 {dimension_numbers = #tpu.dot_dimension_numbers<[1], [0], [0], [1], [0, 0, 1, 1], [], []>} : vector<8x32xbf16>, vector<32x64xbf16>, vector<8x64xf32> -> vector<8x64xf32>
    %c0_57 = arith.constant 0 : index
    %c0_58 = arith.constant 0 : index
    %163 = vector.load %arg10[%c0_57, %c0_58] : memref<1x64xf32, #tpu.memory_space<vmem>>, vector<1x64xf32>
    %164 = vector.broadcast %163 : vector<1x64xf32> to vector<8x64xf32>
    %165 = arith.addf %162, %164 : vector<8x64xf32>
    %166 = arith.mulf %165, %165 : vector<8x64xf32>
    %167 = arith.mulf %165, %166 : vector<8x64xf32>
    %cst_59 = arith.constant 4.471500e-02 : f32
    %168 = vector.broadcast %cst_59 : f32 to vector<8x64xf32>
    %169 = arith.mulf %168, %167 : vector<8x64xf32>
    %170 = arith.addf %165, %169 : vector<8x64xf32>
    %cst_60 = arith.constant 0.797884583 : f32
    %171 = vector.broadcast %cst_60 : f32 to vector<8x64xf32>
    %172 = arith.mulf %171, %170 : vector<8x64xf32>
    %173 = math.tanh %172 : vector<8x64xf32>
    %cst_61 = arith.constant 1.000000e+00 : f32
    %174 = vector.broadcast %cst_61 : f32 to vector<8x64xf32>
    %175 = arith.addf %174, %173 : vector<8x64xf32>
    %cst_62 = arith.constant 5.000000e-01 : f32
    %176 = vector.broadcast %cst_62 : f32 to vector<8x64xf32>
    %177 = arith.mulf %176, %175 : vector<8x64xf32>
    %178 = arith.mulf %165, %177 : vector<8x64xf32>
    %179 = arith.truncf %178 : vector<8x64xf32> to vector<8x64xbf16>
    %c0_63 = arith.constant 0 : index
    %c0_64 = arith.constant 0 : index
    %180 = vector.load %arg11[%c0_63, %c0_64] : memref<64x32xbf16, #tpu.memory_space<vmem>>, vector<64x32xbf16>
    %cst_65 = arith.constant dense<0.000000e+00> : vector<8x32xf32>
    %181 = tpu.matmul %179, %180, %cst_65 {dimension_numbers = #tpu.dot_dimension_numbers<[1], [0], [0], [1], [0, 0, 1, 1], [], []>} : vector<8x64xbf16>, vector<64x32xbf16>, vector<8x32xf32> -> vector<8x32xf32>
    %c0_66 = arith.constant 0 : index
    %c0_67 = arith.constant 0 : index
    %182 = vector.load %arg12[%c0_66, %c0_67] : memref<1x32xf32, #tpu.memory_space<vmem>>, vector<1x32xf32>
    %183 = vector.broadcast %182 : vector<1x32xf32> to vector<8x32xf32>
    %184 = arith.addf %181, %183 : vector<8x32xf32>
    %185 = arith.addf %159, %184 : vector<8x32xf32>
    %c0_68 = arith.constant 0 : index
    %c0_69 = arith.constant 0 : index
    %186 = vector.load %arg13[%c0_68, %c0_69] : memref<2x32xf32, #tpu.memory_space<vmem>>, vector<1x32xf32>
    %187 = vector.shape_cast %186 : vector<1x32xf32> to vector<32xf32>
    %c1_70 = arith.constant 1 : index
    %c0_71 = arith.constant 0 : index
    %188 = vector.load %arg13[%c1_70, %c0_71] : memref<2x32xf32, #tpu.memory_space<vmem>>, vector<1x32xf32>
    %189 = vector.shape_cast %188 : vector<1x32xf32> to vector<32xf32>
    %cst_72 = arith.constant dense<0.000000e+00> : vector<8xf32>
    %190 = vector.multi_reduction <add>, %185, %cst_72 [1] : vector<8x32xf32> to vector<8xf32>
    %191 = vector.shape_cast %190 : vector<8xf32> to vector<8x1xf32>
    %cst_73 = arith.constant 3.200000e+01 : f32
    %192 = vector.broadcast %cst_73 : f32 to vector<8x1xf32>
    %193 = arith.divf %191, %192 : vector<8x1xf32>
    %194 = vector.broadcast %193 : vector<8x1xf32> to vector<8x32xf32>
    %195 = arith.subf %185, %194 : vector<8x32xf32>
    %196 = arith.mulf %195, %195 : vector<8x32xf32>
    %cst_74 = arith.constant dense<0.000000e+00> : vector<8xf32>
    %197 = vector.multi_reduction <add>, %196, %cst_74 [1] : vector<8x32xf32> to vector<8xf32>
    %198 = vector.shape_cast %197 : vector<8xf32> to vector<8x1xf32>
    %cst_75 = arith.constant 3.200000e+01 : f32
    %199 = vector.broadcast %cst_75 : f32 to vector<8x1xf32>
    %200 = arith.divf %198, %199 : vector<8x1xf32>
    %201 = vector.broadcast %193 : vector<8x1xf32> to vector<8x32xf32>
    %202 = arith.subf %185, %201 : vector<8x32xf32>
    %cst_76 = arith.constant 9.99999996E-13 : f32
    %203 = vector.broadcast %cst_76 : f32 to vector<8x1xf32>
    %204 = arith.addf %200, %203 : vector<8x1xf32>
    %205 = math.rsqrt %204 : vector<8x1xf32>
    %206 = vector.broadcast %205 : vector<8x1xf32> to vector<8x32xf32>
    %207 = arith.mulf %202, %206 : vector<8x32xf32>
    %208 = vector.shape_cast %187 : vector<32xf32> to vector<1x32xf32>
    %209 = vector.broadcast %208 : vector<1x32xf32> to vector<8x32xf32>
    %210 = arith.mulf %207, %209 : vector<8x32xf32>
    %211 = vector.shape_cast %189 : vector<32xf32> to vector<1x32xf32>
    %212 = vector.broadcast %211 : vector<1x32xf32> to vector<8x32xf32>
    %213 = arith.addf %210, %212 : vector<8x32xf32>
    %c0_77 = arith.constant 0 : index
    %c0_78 = arith.constant 0 : index
    %c0_79 = arith.constant 0 : index
    %214 = vector.load %arg14[%c0_77, %c0_78, %c0_79] : memref<1x8x32xf32, #tpu.memory_space<vmem>>, vector<1x8x32xf32>
    %215 = vector.shape_cast %214 : vector<1x8x32xf32> to vector<8x32xf32>
    %216 = vector.shape_cast %213 : vector<8x32xf32> to vector<1x8x32xf32>
    tpu.vector_store %arg14[%c0_77, %c0_78, %c0_79], %216 {strides = array<i32>} : memref<1x8x32xf32, #tpu.memory_space<vmem>>, vector<1x8x32xf32>,
    return
  }
  func.func @transform_0(%arg0: i32) -> (i32, i32, i32) {
    %c0_i32 = arith.constant 0 : i32
    %c0_i32_0 = arith.constant 0 : i32
    %c0_i32_1 = arith.constant 0 : i32
    return %arg0, %c0_i32, %c0_i32_0 : i32, i32, i32
  }
  func.func @transform_1(%arg0: i32) -> (i32, i32, i32) {
    %c0_i32 = arith.constant 0 : i32
    %c0_i32_0 = arith.constant 0 : i32
    %c0_i32_1 = arith.constant 0 : i32
    return %arg0, %c0_i32, %c0_i32_0 : i32, i32, i32
  }
  func.func @transform_2(%arg0: i32) -> (i32, i32) {
    %c0_i32 = arith.constant 0 : i32
    %c0_i32_0 = arith.constant 0 : i32
    %c0_i32_1 = arith.constant 0 : i32
    return %c0_i32, %c0_i32_0 : i32, i32
  }
  func.func @transform_3(%arg0: i32) -> (i32, i32) {
    %c0_i32 = arith.constant 0 : i32
    %c0_i32_0 = arith.constant 0 : i32
    %c0_i32_1 = arith.constant 0 : i32
    return %c0_i32, %c0_i32_0 : i32, i32
  }
  func.func @transform_4(%arg0: i32) -> (i32, i32) {
    %c0_i32 = arith.constant 0 : i32
    %c0_i32_0 = arith.constant 0 : i32
    %c0_i32_1 = arith.constant 0 : i32
    return %c0_i32, %c0_i32_0 : i32, i32
  }
  func.func @transform_5(%arg0: i32) -> (i32, i32) {
    %c0_i32 = arith.constant 0 : i32
    %c0_i32_0 = arith.constant 0 : i32
    %c0_i32_1 = arith.constant 0 : i32
    return %c0_i32, %c0_i32_0 : i32, i32
  }
  func.func @transform_6(%arg0: i32) -> (i32, i32) {
    %c0_i32 = arith.constant 0 : i32
    %c0_i32_0 = arith.constant 0 : i32
    %c0_i32_1 = arith.constant 0 : i32
    return %c0_i32, %c0_i32_0 : i32, i32
  }
  func.func @transform_7(%arg0: i32) -> (i32, i32) {
    %c0_i32 = arith.constant 0 : i32
    %c0_i32_0 = arith.constant 0 : i32
    %c0_i32_1 = arith.constant 0 : i32
    return %c0_i32, %c0_i32_0 : i32, i32
  }
  func.func @transform_8(%arg0: i32) -> (i32, i32) {
    %c0_i32 = arith.constant 0 : i32
    %c0_i32_0 = arith.constant 0 : i32
    %c0_i32_1 = arith.constant 0 : i32
    return %c0_i32, %c0_i32_0 : i32, i32
  }
  func.func @transform_9(%arg0: i32) -> (i32, i32) {
    %c0_i32 = arith.constant 0 : i32
    %c0_i32_0 = arith.constant 0 : i32
    %c0_i32_1 = arith.constant 0 : i32
    return %c0_i32, %c0_i32_0 : i32, i32
  }
  func.func @transform_10(%arg0: i32) -> (i32, i32) {
    %c0_i32 = arith.constant 0 : i32
    %c0_i32_0 = arith.constant 0 : i32
    %c0_i32_1 = arith.constant 0 : i32
    return %c0_i32, %c0_i32_0 : i32, i32
  }
  func.func @transform_11(%arg0: i32) -> (i32, i32) {
    %c0_i32 = arith.constant 0 : i32
    %c0_i32_0 = arith.constant 0 : i32
    %c0_i32_1 = arith.constant 0 : i32
    return %c0_i32, %c0_i32_0 : i32, i32
  }
  func.func @transform_12(%arg0: i32) -> (i32, i32) {
    %c0_i32 = arith.constant 0 : i32
    %c0_i32_0 = arith.constant 0 : i32
    %c0_i32_1 = arith.constant 0 : i32
    return %c0_i32, %c0_i32_0 : i32, i32
  }
  func.func @transform_13(%arg0: i32) -> (i32, i32, i32) {
    %c0_i32 = arith.constant 0 : i32
    %c0_i32_0 = arith.constant 0 : i32
    %c0_i32_1 = arith.constant 0 : i32
    return %arg0, %c0_i32, %c0_i32_0 : i32, i32, i32
  }
}

</mosaic_0001>

<bundles_post_ra>
// kernel: tpu_custom_call.1
= control target key start
LH: loop header
LB: loop body
LE: loop exit
PB: predicated region body
PF: predicated region fallthrough
CT: control target
= control target key end

     0   :  { %s2301_s0 = inlined_call_operand.vmem [shape: f32[2,8,32], index: 0, kind: input, shape index: {}]   ;;  %s2302_s1 = inlined_call_operand.vmem [shape: f32[2,1,8], index: 1, kind: input, shape index: {}]   ;;  %s2303_s2 = inlined_call_operand.vmem [shape: f32[2,32], index: 2, kind: input, shape index: {}]   ;;  %s2304_s3 = inlined_call_operand.vmem [shape: bf16[32,96], index: 3, kind: input, shape index: {}]   ;;  %s2305_s4 = inlined_call_operand.vmem [shape: f32[1,96], index: 4, kind: input, shape index: {}]   ;;  %s2306_s5 = inlined_call_operand.vmem [shape: bf16[32,32], index: 5, kind: input, shape index: {}]   ;;  %s2307_s6 = inlined_call_operand.vmem [shape: f32[1,32], index: 6, kind: input, shape index: {}]   ;;  %s2308_s7 = inlined_call_operand.vmem [shape: f32[2,32], index: 7, kind: input, shape index: {}]   ;;  %s2309_s8 = inlined_call_operand.hbm [shape: bf16[32,64], index: 8, kind: input, shape index: {}]   ;;  %s2310_s9 = inlined_call_operand.vmem [shape: f32[1,64], index: 9, kind: input, shape index: {}]   ;;  %s2311_s10 = inlined_call_operand.vmem [shape: bf16[64,32], index: 10, kind: input, shape index: {}]   ;;  %s2312_s11 = inlined_call_operand.vmem [shape: f32[1,32], index: 11, kind: input, shape index: {}]   ;;  %s2313_s12 = inlined_call_operand.vmem [shape: f32[2,32], index: 12, kind: input, shape index: {}]   ;;  %s2314_s13 = inlined_call_operand.hbm [shape: f32[2,8,32], index: 13, kind: output, shape index: {}]  }
   0x1   :  { %2321 = sst [smem:[#allocation11_spill]] %s2301_s0 }
   0x2   :  { %18 = vsyncpa [#allocation3], 0 }
   0x3   :  { %19 = vsyncpa [#allocation4], 0 }
   0x4   :  { %21 = vsyncpa [#allocation4 + $0x1], 0  ;;  %s1980_s25 = smov 0   ;;  %s1982_s26 = smov 0  }
   0x5   :  { %s1984_s27 = smov 0   ;;  %s1986_s28 = smov 0  }
   0x6 LB: > { %2322 = sst [smem:[#allocation8_spill]] %s1887_s27  ;;  %s2001_s29 = sadd.s32 4294967295, %s1891_s28   ;;  %s1891_s28 = sphi %s1986_s28, %s2335_s28   ;;  %s1887_s27 = sphi %s1984_s27, %s2337_s27   ;;  %s1883_s26 = sphi %s1982_s26, %s2339_s26   ;;  %s1879_s25 = sphi %s1980_s25, %s2338_s25  }
   0x7   : > { %s1519_s30 = sadd.s32 4294967294, %s1891_s28   ;;  %s2005_s14 = sadd.s32 1, %s1891_s28  }
   0x8   : > { %2323 = sst [smem:[#allocation9_spill]] %s2005_s14  ;;  %s317_s15 = sadd.s32 1, %s1887_s27 }
   0x9   : > { %s314_s16 = ssub.s32 %s1891_s28, %s2005_s14  ;;  %p327_p0 = scmp.ne.s32.totalorder %s1887_s27, %s1883_s26 }
   0xa   : > { %p315_p1 = scmp.eq.s32.totalorder %s314_s16, 0  ;;  %p328_p2 = scmp.eq.s32.totalorder %s2001_s29, 1 }
   0xb   : > { %p333_p3 = scmp.ne.s32.totalorder %s1883_s26, %s1879_s25  ;;  %p334_p4 = scmp.eq.s32.totalorder %s1519_s30, 1 }
   0xc   : > { %s2016_s17 = scalar_select %p315_p1, %s1887_s27, %s317_s15  }
   0xd   : > { %p2018_p5 = por %p328_p2, %p327_p0  ;;  %p2022_p6 = por %p334_p4, %p333_p3 }
   0xe   : > { %2324 = sst [smem:[#allocation10_spill]] %s2016_s17  ;;  %p1520_p7 = scmp.ge.s32.totalorder %s1891_s28, 1 }
   0xf   : > { %s2325_s18 = scalar_select %p2018_p5, 1, 0 }
  0x10   : > { %s2326_s19 = scalar_select %p2022_p6, 1, 0 }
  0x11   : > { %p341_p8 = scmp.lt.s32.totalorder %s1891_s28, 3  ;;  %p2318_p9 = scmp.eq.s32.totalorder %s2001_s29, 0 }
  0x12   : > { %s1893_s21 = smov [#allocation2]   ;;  %s1797_s15 = scalar_lea.hbm %s2309_s8, 256 }
  0x13   : > { %p2029_p10 = pnand %p1520_p7, %p341_p8  ;;  %s371_s22 = sshll.u32 %s1893_s21, 4  ;;  %s372_s22 = int_to_ptr.vmem [resolvable:$true] %s371_s22 }
  0x14   : > { %p1798_p13 = scmp.ne.s32.totalorder %s2309_s8, %s1797_s15  ;;  %p1804_p3 = scmp.lt.u32.totalorder %s1797_s15, %s2309_s8 }
  0x15   : > { %s2327_s20 = scalar_select %p2029_p10, 1, 0 }
  0x16   : > { %p1706_p11 = pneg %p2029_p10 }
  0x18   : > { %p2037_p12 = pnand %p2318_p9, %p1706_p11 }
  0x1a   : > { %p1799_p0 = pneg %p2037_p12 }
  0x1c   : > { %p1800_p1 = pnand %p1799_p0, %p1798_p13 }
  0x1e   : > { %p1801_p2 = pneg %p1800_p1 }
  0x20   : > { %p1806_p4 = pnand %p1804_p3, %p1801_p2 }
  0x22   : > { %1809 = shalt.err (!%p1806_p4)
}
  0x23   : > { %s1810_s14 = scalar_lea.vmem %s372_s22, 256  ;;  %p1818_p9 = scmp.lt.s32.totalorder %s372_s22, %s372_s22 }
  0x24   : > { %p1811_p7 = scmp.ne.s32.totalorder %s372_s22, %s1810_s14  ;;  %p1819_p6 = scmp.lt.s32.totalorder %s1810_s14, %s1810_s14 }
  0x26   : > { %p1813_p8 = pnand %p1811_p7, %p1799_p0  ;;  %p1820_p5 = por %p1819_p6, %p1818_p9 }
  0x28   : > { %p1814_p11 = pneg %p1813_p8 }
  0x2a   : > { %p1821_p10 = pnand %p1820_p5, %p1814_p11 }
  0x2c   : > { %1824 = shalt.err (!%p1821_p10)
}
  0x2d   : > { %s1894_s17 = smov 64   ;;  %s1895_s24 = smov 4  }
  0x2e   : > { %1709 = dma.hbm_to_vmem [thread:$0]  (!%p2037_p12), %s2309_s8, 256, %s372_s22, [#allocation3], %s1894_s17, %s1894_s17, %s1895_s24  }
  0x2f   : > { %p2329_p13 = scmp.ne.s32.totalorder %s2327_s20, 0 }
  0x30   : > { %p2330_p1 = scmp.eq.s32.totalorder (!%p2329_p13), %s2001_s29, 0 }
  0x31   : > { %412 = sbr.rel (%p2329_p13) target bundleno = 4081 (0xff1), region = 72 }
  0x38   : > { %1870 = dma.done.wait (%p2330_p1), [#allocation3], 256   ;;  %p2331_p0 = pmov %p2330_p1 }
  0x39   : > { %p458_p5 = scmp.lt.s32.totalorder %s2001_s29, 1  ;;  %s2332_s0 = sld [smem:[#allocation11_spill]]  ;;  %vm469_vm0 = vcmask 261120   ;;  %v1765_v7 = vld [vmem:[%s2304_s3] sm:$0xff]   ;;  %v1896_v8 = vmov 0.0   ;;  %v1766_v9 = vld [vmem:[%s2304_s3 + $0x8] sm:$0xff]  }
  0x3a   : > { %1872 = vsyncadd (%p2331_p0), [#allocation3], 4294967040  ;;  %1600 = vmatprep.subr.bf16.mxu1 %v1896_v8  ;;  %1614 = vmatprep.subr.bf16.mxu0 %v1896_v8  ;;  %vm1897_vm1 = vmmov 0   ;;  %v1527_v14 = vld [vmem:[%s2303_s2] ss:$0 sm:$0xff]  ;;  %s1898_s20 = smov 120  }
  0x3b   : > { %s2065_s27 = scalar_select %p458_p5, %s2001_s29, 1  ;;  %1601 = vmatpush3.bf16.msra.mxu1 %v1765_v7  ;;  %1604 = vmatprep.mubr.msk.bf16.mxu1 %vm1897_vm1, %v1896_v8  ;;  %v1528_v16 = vld [vmem:[%s2303_s2 + $0x1] ss:$0 sm:$0xff]  ;;  %v1529_v20 = vld [vmem:[%s2305_s4] ss:$0 sm:$0xff]  ;;  %vm572_vm2 = vcmask 64512  }
  0x3c   : > { %1602 = vmatprep.subr.bf16.mxu1 %v1896_v8  ;;  %1616 = vmatprep.mubr.msk.bf16.mxu0 %vm1897_vm1, %v1896_v8  ;;  %s1899_s21 = smov 96   ;;  %s1900_s17 = smov 88   ;;  %vm636_vm3 = vcmask 1043456   ;;  %vm1354_vm4 = vcmask 523264  }
  0x3d   : > { %s1526_s14 = sshll.u32 %s2065_s27, 3  ;;  %s464_s16 = scalar_lea.vmem %s2302_s1, %s2065_s27 }
  0x3e   : > { %v2123_v32 = vld [vmem:[%s464_s16] ss:$0 sm:$0xff]  ;;  %s1901_s27 = smov 56   ;;  %s1903_s23 = smov 80  }
  0x3f   : > { %s461_s22 = scalar_lea.vmem %s2332_s0, %s1526_s14  ;;  %1603 = vmatpush3.bf16.msra.mxu1 %v1766_v9  ;;  %s1902_s14 = smov 64  }
  0x40   : > { %v466_v0 = vld [vmem:[%s461_s22] sm:$0xff]  ;;  %1608 = vmatprep.subr.bf16.mxu1 %v1896_v8  ;;  %s1904_s15 = smov 112   ;;  %s1905_s24 = smov 48  }
  0x41   : > { %v470_v1 = vsel %vm469_vm0, %v466_v0, 0.0  ;;  %s1906_s30 = smov 104   ;;  %s1907_s16 = smov 72  }
  0x42   : > { %471 = vadd.xlane.f32.xlu0 %v470_v1  ;;  %p2333_p9 = scmp.ne.s32.totalorder %s2325_s18, 0 }
  0xcf   : > { %v472_v2 = vpop.xlane.xlu0 %471 }
  0xd0   : > { %v474_v3 = vmul.f32 0.03125, %v472_v2 }
  0xd2   : > { %v475_v4 = vsub.f32 %v466_v0, %v474_v3  ;;  %v681_v3 = vld [vmem:[%s2306_s5] sm:$0xf] }
  0xd4   : > { %v476_v5 = vmul.f32 %v475_v4, %v475_v4 }
  0xd6   : > { %v477_v6 = vsel %vm469_vm0, %v476_v5, 0.0  ;;  %v793_v5 = vld [vmem:[%s2306_s5 + $0x4] sm:$0xf] }
  0xd7   : > { %478 = vadd.xlane.f32.xlu0 %v477_v6  ;;  %v798_v6 = vsel %vm636_vm3, %v793_v5, 0 }
 0x164   : > { %v479_v10 = vpop.xlane.xlu0 %478 }
 0x165   : > { %v480_v11 = vmul.f32 0.03125, %v479_v10 }
 0x167   : > { %v481_v12 = vadd.f32 1e-12, %v480_v11 }
 0x169   : > { %1773 = vrsqrt.f32 %v481_v12 }
 0x173   : > { %v1774_v13 = vpop.eup %1773 }
 0x174   : > { %v483_v15 = vmul.f32 %v1774_v13, %v475_v4  ;;  %v844_v4 = vsel %vm636_vm3, %v681_v3, 0 }
 0x176   : > { %v488_v17 = vmul.f32 %v1527_v14, %v483_v15 }
 0x178   : > { %v2093_v18 = vadd.f32 %v1528_v16, %v488_v17 }
 0x17a   : > { %v494_v19 = vpack.c.bf16 %v2093_v18, %v2093_v18 }
 0x17c   : > { %1605 = vmatmul.mubr.msk.bf16.vlgmr.msra.gmra.mrb[0].mxu1 %vm469_vm0, %v494_v19 }
 0x17d   : > { %1610 = vmatprep.mubr.msk.bf16.mxu1 %vm1897_vm1, %v1896_v8 }
 0x24f   : > { %v555_v21 = vpop.f32.mrb[0].mxu1 }
 0x250   : > { %v556_v22 = vadd.f32 %v1529_v20, %v555_v21  ;;  %v1606_v23 = vpop.f32.mrb[1].mxu1 }
 0x251   : > { %v558_v24 = vpop.f32.mrb[2].mxu1 }
 0x252   : > { %v2103_v25 = vpack.c.bf16 %v556_v22, %v556_v22  ;;  %v1607_v26 = vpop.f32.mrb[3].mxu1 }
 0x254   : > { %682 = vrot.lane.b32.xlu0 %v2103_v25, %s1898_s20  ;;  %570 = vrot.lane.b32.xlu1 %v2103_v25, %s1899_s21 }
 0x258   : > { %684 = vrot.lane.b32.xlu1 %v2103_v25, %s1900_s17  ;;  %s1562_s17 = sshll.u32 %s2001_s29, 7  ;;  %s1909_s29 = smov [#allocation5]  }
 0x259   : > { %s2258_s0 = scalar_lea.hbm %s2314_s13, %s1562_s17 }
 0x2c6   : > { %v571_v27 = vpop.permute.xlu1 %570  ;;  %v683_v31 = vpop.permute.xlu0 %682 }
 0x2c7   : > { %v577_v28 = vsel %vm572_vm2, %v571_v27, 0 }
 0x2c8   : > { %1609 = vmatpush3.bf16.xpose.msra.mxu1 %v577_v28 }
 0x2c9   : > { %1620 = vmatprep.subr.bf16.mxu1 %v1896_v8 }
 0x2ca   : > { %v685_v29 = vpop.permute.xlu1 %684 }
 0x2cb   : > { %v690_v30 = vsel %vm572_vm2, %v685_v29, 0 }
 0x2cf   : > { %1611 = vmatmul.mubr.msk.bf16.vlgmr.msra.gmra.mrb[4].mxu1 %vm572_vm2, %v2103_v25 }
 0x2d0   : > { %1621 = vmatpush3.bf16.xpose.msra.mxu1 %v690_v30  ;;  %1622 = vmatprep.mubr.msk.bf16.mxu1 %vm1897_vm1, %v1896_v8 }
 0x2d1   : > { %1632 = vmatprep.subr.bf16.mxu1 %v1896_v8 }
 0x2d7   : > { %1623 = vmatmul.mubr.msk.bf16.vlgmr.msra.gmra.mrb[8].mxu1 %vm572_vm2, %v683_v31 }
 0x2d8   : > { %1634 = vmatprep.mubr.msk.bf16.mxu1 %vm1897_vm1, %v1896_v8  ;;  %1633 = vmatpush3.bf16.msra.mxu1 %v798_v6 }
 0x2d9   : > { %1644 = vmatprep.subr.bf16.mxu1 %v1896_v8 }
 0x3a2   : > { %v613_v33 = vpop.f32.mrb[4].mxu1 }
 0x3a3   : > { %v614_v34 = vadd.f32 %v2123_v32, %v613_v33  ;;  %v1612_v35 = vpop.f32.mrb[5].mxu1 }
 0x3a4   : > { %v616_v36 = vpop.f32.mrb[6].mxu1 }
 0x3a5   : > { %v1613_v37 = vpop.f32.mrb[7].mxu1  ;;  %v619_v38 = vsel %vm572_vm2, %v614_v34, -inf }
 0x3a6   : > { %620 = vmax.xlane.f32.xlu1 %v619_v38 }
 0x3aa   : > { %v726_v39 = vpop.f32.mrb[8].mxu1 }
 0x3ab   : > { %v727_v40 = vadd.f32 %v2123_v32, %v726_v39  ;;  %v1624_v41 = vpop.f32.mrb[9].mxu1 }
 0x3ac   : > { %v729_v42 = vpop.f32.mrb[10].mxu1 }
 0x3ad   : > { %v1625_v43 = vpop.f32.mrb[11].mxu1  ;;  %v732_v44 = vsel %vm572_vm2, %v727_v40, -inf }
 0x3ae   : > { %733 = vmax.xlane.f32.xlu0 %v732_v44 }
 0x3c4   : > { %744 = vrot.lane.b32.xlu0 %v2103_v25, %s1901_s27 }
 0x433   : > { %v621_v45 = vpop.xlane.xlu1 %620 }
 0x434   : > { %v622_v46 = vsub.f32 %v614_v34, %v621_v45 }
 0x436   : > { %v623_v47 = vmul.f32 1.442695, %v622_v46 }
 0x438   : > { %1775 = vpow2.f32 %v623_v47 }
 0x43b   : > { %v734_v48 = vpop.xlane.xlu0 %733 }
 0x43c   : > { %v735_v49 = vsub.f32 %v727_v40, %v734_v48 }
 0x43e   : > { %v736_v50 = vmul.f32 1.442695, %v735_v49 }
 0x43f   : > { %v745_v61 = vpop.permute.xlu0 %744 }
 0x440   : > { %1777 = vpow2.f32 %v736_v50  ;;  %v750_v63 = vsel %vm636_vm3, %v745_v61, 0 }
 0x442   : > { %v1776_v51 = vpop.eup %1775 }
 0x443   : > { %v625_v52 = vsel %vm572_vm2, %v1776_v51, 0.0 }
 0x444   : > { %626 = vadd.xlane.f32.xlu1 %v625_v52 }
 0x44a   : > { %v1778_v53 = vpop.eup %1777 }
 0x44b   : > { %v738_v54 = vsel %vm572_vm2, %v1778_v53, 0.0 }
 0x44c   : > { %739 = vadd.xlane.f32.xlu1 %v738_v54 }
 0x45d   : > { %631 = vrot.lane.b32.xlu1 %v2103_v25, %s1902_s14  ;;  %s455_s14 = sand.u32 1, %s1883_s26  }
 0x461   : > { %888 = vrot.lane.b32.xlu1 %v2103_v25, %s1903_s23  ;;  %s1908_s23 = smov 40  }
 0x465   : > { %886 = vrot.lane.b32.xlu1 %v2103_v25, %s1904_s15  ;;  %s1426_s15 = scalar_lea.sflag [#allocation4], %s455_s14 }
 0x4d1   : > { %v627_v55 = vpop.xlane.xlu1 %626 }
 0x4d2   : > { %1779 = vrcp.f32 %v627_v55 }
 0x4d9   : > { %v740_v56 = vpop.xlane.xlu1 %739 }
 0x4da   : > { %1781 = vrcp.f32 %v740_v56 }
 0x4dc   : > { %v1780_v57 = vpop.eup %1779 }
 0x4dd   : > { %v632_v58 = vpop.permute.xlu1 %631  ;;  %v629_v59 = vmul.f32 %v1780_v57, %v1776_v51 }
 0x4de   : > { %v638_v60 = vsel %vm636_vm3, %v632_v58, 0 }
 0x4df   : > { %1615 = vmatpush3.bf16.msra.mxu0 %v638_v60  ;;  %v630_v62 = vpack.c.bf16 %v629_v59, %v629_v59 }
 0x4e0   : > { %1626 = vmatprep.subr.bf16.mxu0 %v1896_v8 }
 0x4e1   : > { %v889_v13 = vpop.permute.xlu1 %888 }
 0x4e2   : > { %1617 = vmatmul.mubr.msk.bf16.vlgmr.msra.gmra.mrb[0].mxu0 %vm572_vm2, %v630_v62  ;;  %v894_v19 = vsel %vm572_vm2, %v889_v13, 0 }
 0x4e3   : > { %1627 = vmatpush3.bf16.msra.mxu0 %v750_v63  ;;  %1628 = vmatprep.mubr.msk.bf16.mxu0 %vm1897_vm1, %v1896_v8 }
 0x4e4   : > { %v1782_v0 = vpop.eup %1781  ;;  %1638 = vmatprep.subr.bf16.mxu0 %v1896_v8 }
 0x4e5   : > { %v742_v1 = vmul.f32 %v1782_v0, %v1778_v53  ;;  %v887_v21 = vpop.permute.xlu1 %886  ;;  %v997_v53 = vld [vmem:[%s2306_s5 + $0x8] sm:$0xf] }
 0x4e6   : > { %v1002_v54 = vsel %vm636_vm3, %v997_v53, 0  ;;  %v1770_v53 = vld [vmem:[%s2311_s10 + $0x8] sm:$0xff]  }
 0x4e7   : > { %v743_v2 = vpack.c.bf16 %v742_v1, %v742_v1 }
 0x4ea   : > { %1629 = vmatmul.mubr.msk.bf16.vlgmr.msra.gmra.mrb[4].mxu0 %vm572_vm2, %v743_v2 }
 0x4eb   : > { %1640 = vmatprep.mubr.msk.bf16.mxu0 %vm1897_vm1, %v1896_v8  ;;  %1639 = vmatpush3.bf16.msra.mxu0 %v844_v4 }
 0x4ec   : > { %1650 = vmatprep.subr.bf16.mxu0 %v1896_v8 }
 0x5b5   : > { %v674_v7 = vpop.f32.mrb[0].mxu0 }
 0x5b6   : > { %v680_v9 = vpack.c.bf16 %v674_v7, %v674_v7  ;;  %v1618_v10 = vpop.f32.mrb[1].mxu0 }
 0x5b7   : > { %v677_v11 = vpop.f32.mrb[2].mxu0 }
 0x5b8   : > { %v1619_v12 = vpop.f32.mrb[3].mxu0  ;;  %1641 = vmatmul.mubr.msk.bf16.vlgmr.msra.gmra.mrb[8].mxu0 %vm572_vm2, %v680_v9 }
 0x5b9   : > { %1652 = vmatprep.mubr.msk.bf16.mxu0 %vm1897_vm1, %v1896_v8 }
 0x5bd   : > { %v786_v14 = vpop.f32.mrb[4].mxu0 }
 0x5be   : > { %v792_v15 = vpack.c.bf16 %v786_v14, %v786_v14  ;;  %v1630_v16 = vpop.f32.mrb[5].mxu0 }
 0x5bf   : > { %v789_v17 = vpop.f32.mrb[6].mxu0 }
 0x5c0   : > { %v1631_v20 = vpop.f32.mrb[7].mxu0  ;;  %1635 = vmatmul.mubr.msk.bf16.vlgmr.msra.gmra.mrb[12].mxu1 %vm572_vm2, %v792_v15 }
 0x5c1   : > { %1645 = vmatpush3.bf16.xpose.msra.mxu1 %v894_v19  ;;  %1646 = vmatprep.mubr.msk.bf16.mxu1 %vm1897_vm1, %v1896_v8 }
 0x5c2   : > { %1656 = vmatprep.subr.bf16.mxu1 %v1896_v8 }
 0x5c8   : > { %1647 = vmatmul.mubr.msk.bf16.vlgmr.msra.gmra.mrb[16].mxu1 %vm572_vm2, %v887_v21 }
 0x5c9   : > { %1658 = vmatprep.mubr.msk.bf16.mxu1 %vm1897_vm1, %v1896_v8  ;;  %1657 = vmatpush3.bf16.msra.mxu1 %v1002_v54  ;;  %v1771_v54 = vld [vmem:[%s2311_s10 + $0x10] sm:$0xff]  }
 0x5ca   : > { %1668 = vmatprep.subr.bf16.mxu1 %v1896_v8 }
 0x68b   : > { %v880_v22 = vpop.f32.mrb[8].mxu0 }
 0x68c   : > { %v1642_v23 = vpop.f32.mrb[9].mxu0 }
 0x68d   : > { %v883_v24 = vpop.f32.mrb[10].mxu0 }
 0x68e   : > { %v1643_v26 = vpop.f32.mrb[11].mxu0 }
 0x693   : > { %v834_v27 = vpop.f32.mrb[12].mxu1 }
 0x694   : > { %v2166_v28 = vadd.f32 %v880_v22, %v834_v27  ;;  %v1636_v29 = vpop.f32.mrb[13].mxu1  ;;  %v1546_v27 = vld [vmem:[%s2307_s6] ss:$0 sm:$0xff] }
 0x695   : > { %v837_v30 = vpop.f32.mrb[14].mxu1 }
 0x696   : > { %v1637_v31 = vpop.f32.mrb[15].mxu1 }
 0x69b   : > { %v930_v33 = vpop.f32.mrb[16].mxu1 }
 0x69c   : > { %v931_v34 = vadd.f32 %v2123_v32, %v930_v33  ;;  %v1648_v35 = vpop.f32.mrb[17].mxu1 }
 0x69d   : > { %v933_v36 = vpop.f32.mrb[18].mxu1 }
 0x69e   : > { %v1649_v37 = vpop.f32.mrb[19].mxu1  ;;  %v936_v38 = vsel %vm572_vm2, %v931_v34, -inf }
 0x69f   : > { %937 = vmax.xlane.f32.xlu1 %v936_v38 }
 0x6b0   : > { %948 = vrot.lane.b32.xlu1 %v2103_v25, %s1905_s24 }
 0x6b4   : > { %1045 = vrot.lane.b32.xlu1 %v2103_v25, %s1906_s30 }
 0x72c   : > { %v938_v39 = vpop.xlane.xlu1 %937 }
 0x72d   : > { %v939_v40 = vsub.f32 %v931_v34, %v938_v39 }
 0x72f   : > { %v940_v41 = vmul.f32 1.442695, %v939_v40 }
 0x730   : > { %v949_v42 = vpop.permute.xlu1 %948 }
 0x731   : > { %1783 = vpow2.f32 %v940_v41  ;;  %v954_v43 = vsel %vm636_vm3, %v949_v42, 0  ;;  %v1767_v41 = vld [vmem:[#allocation2] sm:$0xff]   ;;  %v1768_v42 = vld [vmem:[#allocation2 + $0x8] sm:$0xff]  }
 0x732   : > { %1651 = vmatpush3.bf16.msra.mxu0 %v954_v43 }
 0x733   : > { %1662 = vmatprep.subr.bf16.mxu0 %v1896_v8 }
 0x734   : > { %v1046_v52 = vpop.permute.xlu1 %1045 }
 0x73b   : > { %v1784_v44 = vpop.eup %1783 }
 0x73c   : > { %v942_v45 = vsel %vm572_vm2, %v1784_v44, 0.0 }
 0x73d   : > { %943 = vadd.xlane.f32.xlu0 %v942_v45 }
 0x753   : > { %1047 = vrot.lane.b32.xlu0 %v2103_v25, %s1907_s16 }
 0x7ca   : > { %v944_v46 = vpop.xlane.xlu0 %943 }
 0x7cb   : > { %1785 = vrcp.f32 %v944_v46  ;;  %v1547_v46 = vld [vmem:[%s2308_s7] ss:$0 sm:$0xff] }
 0x7ce   : > { %v1048_v49 = vpop.permute.xlu0 %1047 }
 0x7cf   : > { %v1053_v51 = vsel %vm572_vm2, %v1048_v49, 0 }
 0x7d5   : > { %v1786_v47 = vpop.eup %1785 }
 0x7d6   : > { %v946_v48 = vmul.f32 %v1786_v47, %v1784_v44 }
 0x7d8   : > { %v947_v50 = vpack.c.bf16 %v946_v48, %v946_v48  ;;  %v1548_v48 = vld [vmem:[%s2308_s7 + $0x1] ss:$0 sm:$0xff] }
 0x7da   : > { %1653 = vmatmul.mubr.msk.bf16.vlgmr.msra.gmra.mrb[12].mxu0 %vm572_vm2, %v947_v50 }
 0x7db   : > { %1663 = vmatpush3.bf16.xpose.msra.mxu0 %v1053_v51  ;;  %1664 = vmatprep.mubr.msk.bf16.mxu0 %vm1897_vm1, %v1896_v8 }
 0x7dc   : > { %1674 = vmatprep.subr.bf16.mxu0 %v1896_v8 }
 0x7e2   : > { %1665 = vmatmul.mubr.msk.bf16.vlgmr.msra.gmra.mrb[16].mxu0 %vm572_vm2, %v1046_v52  ;;  %v1769_v52 = vld [vmem:[%s2311_s10] sm:$0xff]  }
 0x7e3   : > { %1676 = vmatprep.mubr.msk.bf16.mxu0 %vm1897_vm1, %v1896_v8 }
 0x8ad   : > { %v990_v55 = vpop.f32.mrb[12].mxu0 }
 0x8ae   : > { %v996_v56 = vpack.c.bf16 %v990_v55, %v990_v55  ;;  %v1654_v57 = vpop.f32.mrb[13].mxu0  ;;  %v1772_v55 = vld [vmem:[%s2311_s10 + $0x18] sm:$0xff]  }
 0x8af   : > { %v993_v58 = vpop.f32.mrb[14].mxu0 }
 0x8b0   : > { %v1655_v59 = vpop.f32.mrb[15].mxu0  ;;  %1659 = vmatmul.mubr.msk.bf16.vlgmr.msra.gmra.mrb[20].mxu1 %vm572_vm2, %v996_v56  ;;  %v1549_v56 = vld [vmem:[%s2310_s9] ss:$0 sm:$0xff] }
 0x8b1   : > { %1670 = vmatprep.mubr.msk.bf16.mxu1 %vm1897_vm1, %v1896_v8 }
 0x8b5   : > { %v1089_v60 = vpop.f32.mrb[16].mxu0 }
 0x8b6   : > { %v1090_v61 = vadd.f32 %v2123_v32, %v1089_v60  ;;  %v1666_v62 = vpop.f32.mrb[17].mxu0  ;;  %v1156_v32 = vld [vmem:[%s2306_s5 + $0xc] sm:$0xf] }
 0x8b7   : > { %v1092_v63 = vpop.f32.mrb[18].mxu0  ;;  %v1161_v7 = vsel %vm636_vm3, %v1156_v32, 0  ;;  %v1553_v32 = vld [vmem:[%s2312_s11] ss:$0 sm:$0xff] }
 0x8b8   : > { %v1667_v0 = vpop.f32.mrb[19].mxu0  ;;  %v1095_v1 = vsel %vm572_vm2, %v1090_v61, -inf  ;;  %1675 = vmatpush3.bf16.msra.mxu0 %v1161_v7 }
 0x8b9   : > { %1096 = vmax.xlane.f32.xlu1 %v1095_v1  ;;  %1688 = vmatprep.subr.bf16.mxu0 %v1896_v8 }
 0x946   : > { %v1097_v2 = vpop.xlane.xlu1 %1096 }
 0x947   : > { %v1098_v3 = vsub.f32 %v1090_v61, %v1097_v2 }
 0x949   : > { %v1099_v4 = vmul.f32 1.442695, %v1098_v3 }
 0x94b   : > { %1787 = vpow2.f32 %v1099_v4 }
 0x955   : > { %v1788_v5 = vpop.eup %1787 }
 0x956   : > { %v1101_v6 = vsel %vm572_vm2, %v1788_v5, 0.0 }
 0x957   : > { %1102 = vadd.xlane.f32.xlu0 %v1101_v6 }
 0x96d   : > { %1107 = vrot.lane.b32.xlu0 %v2103_v25, %s1908_s23  ;;  %s1525_s23 = sshll.u32 %s455_s14, 3 }
 0x96e   : > { %s457_s24 = scalar_lea.vmem [#allocation5], %s1525_s23  ;;  %s1829_s23 = sshll.u32 %s1909_s29, 4  ;;  %s1830_s23 = int_to_ptr.vmem [resolvable:$false] %s1829_s23 }
 0x96f   : > { %s1439_s30 = sshll.u32 %s457_s24, 4  ;;  %s1831_s20 = scalar_lea.vmem %s1830_s23, 256  ;;  %s2260_s30 = int_to_ptr.vmem [resolvable:$true] %s1439_s30 }
 0x970   : > { %s1825_s22 = scalar_lea.vmem %s2260_s30, 128  ;;  %p1832_p2 = scmp.lt.s32.totalorder %s2260_s30, %s1830_s23 }
 0x971   : > { %p1826_p6 = scmp.ne.s32.totalorder %s2260_s30, %s1825_s22  ;;  %p1833_p3 = scmp.lt.s32.totalorder %s1831_s20, %s1825_s22 }
 0x973   : > { %p1827_p10 = pnand %p1826_p6, %p2333_p9  ;;  %p1834_p4 = por %p1833_p3, %p1832_p2 }
 0x975   : > { %p1828_p12 = pneg %p1827_p10 }
 0x977   : > { %p1835_p7 = pnand %p1834_p4, %p1828_p12 }
 0x983   : > { %v1038_v9 = vpop.f32.mrb[20].mxu1 }
 0x984   : > { %v1044_v10 = vadd.f32 %v1038_v9, %v2166_v28  ;;  %v1660_v11 = vpop.f32.mrb[21].mxu1 }
 0x985   : > { %v1041_v12 = vpop.f32.mrb[22].mxu1 }
 0x986   : > { %v1661_v13 = vpop.f32.mrb[23].mxu1 }
 0x9e4   : > { %v1103_v14 = vpop.xlane.xlu0 %1102 }
 0x9e5   : > { %1789 = vrcp.f32 %v1103_v14 }
 0x9e8   : > { %v1108_v15 = vpop.permute.xlu0 %1107 }
 0x9e9   : > { %v1113_v25 = vsel %vm636_vm3, %v1108_v15, 0 }
 0x9ea   : > { %1669 = vmatpush3.bf16.msra.mxu1 %v1113_v25 }
 0x9eb   : > { %1680 = vmatprep.subr.bf16.mxu1 %v1896_v8 }
 0x9ef   : > { %v1790_v16 = vpop.eup %1789 }
 0x9f0   : > { %v1105_v17 = vmul.f32 %v1790_v16, %v1788_v5 }
 0x9f2   : > { %v1106_v19 = vpack.c.bf16 %v1105_v17, %v1105_v17 }
 0x9f4   : > { %1671 = vmatmul.mubr.msk.bf16.vlgmr.msra.gmra.mrb[24].mxu1 %vm572_vm2, %v1106_v19 }
 0x9f5   : > { %1684 = vmatprep.mubr.msk.bf16.mxu1 %vm1897_vm1, %v1896_v8  ;;  %1681 = vmatpush3.bf16.msra.mxu1 %v1767_v41 }
 0x9f6   : > { %1682 = vmatprep.subr.bf16.mxu1 %v1896_v8 }
 0x9f9   : > { %1683 = vmatpush3.bf16.msra.mxu1 %v1768_v42 }
 0xac7   : > { %v1149_v20 = vpop.f32.mrb[24].mxu1 }
 0xac8   : > { %v1155_v21 = vpack.c.bf16 %v1149_v20, %v1149_v20  ;;  %v1672_v22 = vpop.f32.mrb[25].mxu1 }
 0xac9   : > { %v1152_v23 = vpop.f32.mrb[26].mxu1 }
 0xaca   : > { %v1673_v24 = vpop.f32.mrb[27].mxu1  ;;  %1677 = vmatmul.mubr.msk.bf16.vlgmr.msra.gmra.mrb[20].mxu0 %vm572_vm2, %v1155_v21 }
 0xacb   : > { %1696 = vmatprep.mubr.msk.bf16.mxu0 %vm1897_vm1, %v1896_v8  ;;  %1689 = vmatpush3.bf16.msra.mxu0 %v1769_v52  ;;  %v1559_v24 = vld [vmem:[%s2313_s12] ss:$0 sm:$0xff] }
 0xacc   : > { %1690 = vmatprep.subr.bf16.mxu0 %v1896_v8 }
 0xacf   : > { %1691 = vmatpush3.bf16.msra.mxu0 %v1770_v53 }
 0xad0   : > { %1692 = vmatprep.subr.bf16.mxu0 %v1896_v8 }
 0xad3   : > { %1693 = vmatpush3.bf16.msra.mxu0 %v1771_v54 }
 0xad4   : > { %1694 = vmatprep.subr.bf16.mxu0 %v1896_v8 }
 0xad7   : > { %1695 = vmatpush3.bf16.msra.mxu0 %v1772_v55 }
 0xb9d   : > { %v1197_v26 = vpop.f32.mrb[20].mxu0 }
 0xb9e   : > { %v1203_v28 = vadd.f32 %v1197_v26, %v1044_v10  ;;  %v1678_v29 = vpop.f32.mrb[21].mxu0 }
 0xb9f   : > { %v1200_v30 = vpop.f32.mrb[22].mxu0 }
 0xba0   : > { %v1211_v31 = vadd.f32 %v1546_v27, %v1203_v28  ;;  %v1679_v33 = vpop.f32.mrb[23].mxu0  ;;  %v1560_v27 = vld [vmem:[%s2313_s12 + $0x1] ss:$0 sm:$0xff] }
 0xba2   : > { %v1212_v34 = vadd.f32 %v1211_v31, %v2093_v18 }
 0xba4   : > { %v1215_v35 = vsel %vm469_vm0, %v1212_v34, 0.0 }
 0xba5   : > { %1216 = vadd.xlane.f32.xlu1 %v1215_v35 }
 0xc32   : > { %v1217_v36 = vpop.xlane.xlu1 %1216 }
 0xc33   : > { %v1218_v37 = vmul.f32 0.03125, %v1217_v36 }
 0xc35   : > { %v1219_v38 = vsub.f32 %v1212_v34, %v1218_v37 }
 0xc37   : > { %v1220_v39 = vmul.f32 %v1219_v38, %v1219_v38 }
 0xc39   : > { %v1221_v40 = vsel %vm469_vm0, %v1220_v39, 0.0 }
 0xc3a   : > { %1222 = vadd.xlane.f32.xlu1 %v1221_v40 }
 0xcc7   : > { %v1223_v43 = vpop.xlane.xlu1 %1222 }
 0xcc8   : > { %v1224_v44 = vmul.f32 0.03125, %v1223_v43 }
 0xcca   : > { %v1225_v45 = vadd.f32 1e-12, %v1224_v44 }
 0xccc   : > { %1791 = vrsqrt.f32 %v1225_v45 }
 0xcd6   : > { %v1792_v18 = vpop.eup %1791 }
 0xcd7   : > { %v1227_v47 = vmul.f32 %v1792_v18, %v1219_v38 }
 0xcd9   : > { %v1232_v49 = vmul.f32 %v1547_v46, %v1227_v47 }
 0xcdb   : > { %v1237_v50 = vadd.f32 %v1548_v48, %v1232_v49 }
 0xcdd   : > { %v1238_v51 = vpack.c.bf16 %v1237_v50, %v1237_v50 }
 0xcdf   : > { %1685 = vmatmul.mubr.msk.bf16.vlgmr.msra.gmra.mrb[28].mxu1 %vm469_vm0, %v1238_v51 }
 0xdb2   : > { %v1299_v57 = vpop.f32.mrb[28].mxu1 }
 0xdb3   : > { %v1300_v58 = vadd.f32 %v1549_v56, %v1299_v57  ;;  %v1686_v59 = vpop.f32.mrb[29].mxu1 }
 0xdb4   : > { %v1302_v60 = vpop.f32.mrb[30].mxu1 }
 0xdb5   : > { %v1305_v61 = vmul.f32 %v1300_v58, %v1300_v58  ;;  %v1687_v62 = vpop.f32.mrb[31].mxu1 }
 0xdb7   : > { %v1306_v63 = vmul.f32 %v1305_v61, %v1300_v58 }
 0xdb9   : > { %v1307_v0 = vmul.f32 0.044715, %v1306_v63 }
 0xdbb   : > { %v1308_v1 = vadd.f32 %v1307_v0, %v1300_v58 }
 0xdbd   : > { %v1309_v2 = vmul.f32 0.7978846, %v1308_v1 }
 0xdbf   : > { %1793 = vtanh.f32 %v1309_v2 }
 0xdc9   : > { %v1794_v8 = vpop.eup %1793 }
 0xdca   : > { %v1311_v3 = vadd.f32 1.0, %v1794_v8 }
 0xdcc   : > { %v1312_v4 = vmul.f32 0.5, %v1311_v3 }
 0xdce   : > { %v1313_v5 = vmul.f32 %v1312_v4, %v1300_v58 }
 0xdd0   : > { %v1314_v6 = vpack.c.bf16 %v1313_v5, %v1313_v5 }
 0xdd2   : > { %1697 = vmatmul.mubr.msk.bf16.vlgmr.msra.gmra.mrb[24].mxu0 %vm1354_vm4, %v1314_v6 }
 0xea5   : > { %v1392_v7 = vpop.f32.mrb[24].mxu0 }
 0xea6   : > { %v1393_v9 = vadd.f32 %v1553_v32, %v1392_v7  ;;  %v1698_v10 = vpop.f32.mrb[25].mxu0 }
 0xea7   : > { %v1395_v11 = vpop.f32.mrb[26].mxu0 }
 0xea8   : > { %v1699_v12 = vpop.f32.mrb[27].mxu0  ;;  %v1398_v13 = vadd.f32 %v1393_v9, %v1237_v50 }
 0xeaa   : > { %v1401_v14 = vsel %vm469_vm0, %v1398_v13, 0.0 }
 0xeab   : > { %1402 = vadd.xlane.f32.xlu1 %v1401_v14 }
 0xf38   : > { %v1403_v15 = vpop.xlane.xlu1 %1402 }
 0xf39   : > { %v1404_v25 = vmul.f32 0.03125, %v1403_v15 }
 0xf3b   : > { %v1405_v16 = vsub.f32 %v1398_v13, %v1404_v25 }
 0xf3d   : > { %v1406_v17 = vmul.f32 %v1405_v16, %v1405_v16 }
 0xf3f   : > { %v1407_v19 = vsel %vm469_vm0, %v1406_v17, 0.0 }
 0xf40   : > { %1408 = vadd.xlane.f32.xlu1 %v1407_v19 }
 0xfcd   : > { %v1409_v20 = vpop.xlane.xlu1 %1408 }
 0xfce   : > { %v1410_v21 = vmul.f32 0.03125, %v1409_v20 }
 0xfd0   : > { %v1411_v22 = vadd.f32 1e-12, %v1410_v21 }
 0xfd2   : > { %1795 = vrsqrt.f32 %v1411_v22 }
 0xfdc   : > { %v1796_v23 = vpop.eup %1795 }
 0xfdd   : > { %v1413_v26 = vmul.f32 %v1796_v23, %v1405_v16 }
 0xfdf   : > { %v1418_v28 = vmul.f32 %v1559_v24, %v1413_v26 }
 0xfe1   : > { %v1423_v29 = vadd.f32 %v1560_v27, %v1418_v28 }
 0xfe3   : > { %1424 = vst.msk [vmem:[%s457_s24] sm:$0xff] %vm469_vm0, %v1423_v29 }
 0xfe4   : > { %1838 = shalt.err (!%p1835_p7)
}
 0xfe5   : > { %s1839_s14 = scalar_lea.hbm %s2258_s0, 128  ;;  %s1843_s24 = scalar_lea.hbm %s2314_s13, 256 }
 0xfe6   : > { %p1840_p8 = scmp.ne.s32.totalorder %s2258_s0, %s1839_s14  ;;  %p1844_p1 = scmp.lt.u32.totalorder %s2258_s0, %s2314_s13 }
 0xfe7   : > { %p1845_p0 = scmp.lt.u32.totalorder %s1843_s24, %s1839_s14  ;;  %p1847_p6 = scmp.lt.u32.totalorder %s1839_s14, %s2258_s0 }
 0xfe8   : > { %p1841_p11 = pnand %p1840_p8, %p2333_p9 }
 0xfe9   : > { %p1846_p5 = por %p1845_p0, %p1844_p1 }
 0xfea   : > { %p1842_p13 = pneg %p1841_p11 }
 0xfeb   : > { %p1848_p10 = por %p1847_p6, %p1846_p5 }
 0xfed   : > { %p1849_p12 = pnand %p1848_p10, %p1842_p13 }
 0xfef   : > { %1852 = shalt.err (!%p1849_p12)
}
 0xff0   : > { %1704 = dma.vmem_to_hbm [thread:$0]  (%p2333_p9), %s2260_s30, 128, %s2258_s0, %s1426_s15  }
 0xff1 PF: > { %p1716_p2 = scmp.ge.s32.totalorder %s1891_s28, 2  ;;  %s1451_s22 = sand.u32 1, %s1879_s25  }
 0xff2   : > { %p2334_p3 = scmp.ne.s32.totalorder %s2326_s19, 0  ;;  %s1452_s29 = scalar_lea.sflag [#allocation4], %s1451_s22 }
 0xff4   : > { %p1711_p4 = pnand %p1716_p2, %p2334_p3 }
 0xff6   : > { %1874 = dma.done.wait (!%p1711_p4), %s1452_s29, 128  }
 0xff7   : > { %1876 = vsyncadd (!%p1711_p4), %s1452_s29, 4294967168  ;;  %s2335_s28 = sld [smem:[#allocation9_spill]]  ;;  %s2336_s23 = sld [smem:[#allocation8_spill]] }
 0xff8   : > { %s2337_s27 = sld [smem:[#allocation10_spill]]  ;;  %s2338_s25 = smov %s1883_s26 }
 0xffd   : > { %p24_p7 = scmp.ge.s32.totalorder %s2335_s28, 4   ;;  %s2339_s26 = smov %s2336_s23 }
 0xfff   :  { %26 = sbr.rel (!%p24_p7) target bundleno = 6 (0x6), region = 115 }
0x1006   :  { %1457 = vsyncpa [#allocation3], 1 }
0x1007   :  { %1459 = vsyncpa [#allocation3 + $0x1], 1 }
0x1008   :  { %1460 = vsyncpa [#allocation4], 1 }
0x1009   :  { %1462 = vsyncpa [#allocation4 + $0x1], 1 }

</bundles_post_ra>
